<compile_context>
chip_gen: v6e
topology: v6e:2x2x1
jax: 0.10.0
libtpu: 0.0.40
codegen_flags: <defaults>
</compile_context>

<pallas_src>
import functools

import jax
import jax.numpy as jnp
import numpy as np
from jax.experimental import pallas as pl
from jax.experimental.pallas import tpu as pltpu


# ----------------------------------------------------------------------------
# fused kernel
# ----------------------------------------------------------------------------
def _ln_noaffine(x, eps=1e-5):
    mu = jnp.mean(x, axis=-1, keepdims=True)
    var = jnp.mean(jnp.square(x - mu), axis=-1, keepdims=True)
    return (x - mu) * jax.lax.rsqrt(var + eps)


def _motionq_kernel(qinit_ref, kv_ref,
                    wq_ref, bq_ref, wkv_ref, bkv_ref, wo_ref, bo_ref,
                    w1_ref, b1_ref, w2_ref, b2_ref,
                    wm1_ref, bm1_ref, wm2_ref, bm2_ref,
                    qout_ref, enc_ref,
                    q_state, kvh_state,
                    *, bt, pn2, n_kv, heads, dim_head, hidden):
    l = pl.program_id(1)
    last = pl.num_programs(1) - 1

    @pl.when(l == 0)
    def _init():
        q_state[...] = qinit_ref[...]
        # kv LayerNorm stats are layer-independent (affines folded into Wkv);
        # compute once per batch tile in f32, cache in bf16.
        kvh_state[...] = _ln_noaffine(kv_ref[...]).astype(jnp.bfloat16)

    x = q_state[...]                                   # (bt*pn2, dim)  f32 running state
    kvh = kvh_state[...]                               # (bt*n_kv, dim) bf16, LN'ed kv

    # ---- cross-attention block (LN affines + 1/sqrt(dh) folded into Wq/Wkv) ----
    xh = _ln_noaffine(x).astype(jnp.bfloat16)
    qp = jnp.dot(xh, wq_ref[0], preferred_element_type=jnp.float32) + bq_ref[0]
    kvp = jnp.dot(kvh, wkv_ref[0], preferred_element_type=jnp.float32) + bkv_ref[0]

    # head-batched attention over group axis g = head * bt + batch
    def heads_to_groups(t, rows, col0):
        parts = [t[:, col0 + h * dim_head: col0 + (h + 1) * dim_head]
                 .reshape(bt, rows, dim_head) for h in range(heads)]
        return jnp.concatenate(parts, axis=0).astype(jnp.bfloat16)  # (heads*bt, rows, dh)

    qg = heads_to_groups(qp, pn2, 0)                   # Q (scale pre-folded)
    kg = heads_to_groups(kvp, n_kv, 0)                 # K
    vg = heads_to_groups(kvp, n_kv, hidden)            # V

    s = jnp.einsum('gid,gjd->gij', qg, kg, preferred_element_type=jnp.float32)
    s = s - jnp.max(s, axis=-1, keepdims=True)
    p = jnp.exp(s)
    l_sum = jnp.sum(p, axis=-1, keepdims=True)         # (G, pn2, 1)
    og = jnp.einsum('gij,gjd->gid', p.astype(jnp.bfloat16), vg,
                    preferred_element_type=jnp.float32)
    og = og * pl.reciprocal(l_sum, approx=True)        # normalize after P@V (cheaper)

    # concat heads on lanes -> ONE output projection with K = hidden
    o_cat = jnp.concatenate(
        [og[h * bt:(h + 1) * bt].reshape(bt * pn2, dim_head) for h in range(heads)],
        axis=1).astype(jnp.bfloat16)                   # (bt*pn2, hidden)
    x = x + (jnp.dot(o_cat, wo_ref[0], preferred_element_type=jnp.float32)
             + bo_ref[0])                              # residual 1

    # ---- MLP block (norm_mlp affine pre-folded into fc1) ----
    yh = _ln_noaffine(x).astype(jnp.bfloat16)
    h1 = jax.nn.gelu(jnp.dot(yh, w1_ref[0], preferred_element_type=jnp.float32)
                     + b1_ref[0], approximate=True)
    x = x + (jnp.dot(h1.astype(jnp.bfloat16), w2_ref[0],
                     preferred_element_type=jnp.float32) + b2_ref[0])   # residual 2

    q_state[...] = x

    @pl.when(l == last)
    def _finalize():
        qout_ref[...] = x.astype(qout_ref.dtype)
        # MotionEncoder: 1x1 convs over the channel slot of the (t c) axis,
        # expressed as block-diagonal matmuls (no in-kernel lane reshapes).
        hx = jnp.maximum(
            jnp.dot(x.astype(jnp.bfloat16), wm1_ref[...],
                    preferred_element_type=jnp.float32) + bm1_ref[...], 0.0)
        hy = jnp.maximum(
            jnp.dot(hx.astype(jnp.bfloat16), wm2_ref[...],
                    preferred_element_type=jnp.float32) + bm2_ref[...], 0.0)
        enc_ref[...] = hy.astype(enc_ref.dtype)


# ----------------------------------------------------------------------------
# wrapper
# ----------------------------------------------------------------------------
def motion_q_encoder(mc, params, *, heads, dim_head, use_attn=True, batch_tile=None):
    """mc: (B, C, T, N) float32 -> (encoded_mc, mc_out), like the PyTorch module."""
    if not use_attn:
        return None, mc

    B, C, T, N = mc.shape
    query = params['query']
    pn2, dim = query.shape
    assert dim == T * C, "MotionQEncoder requires dim == T * C"
    hidden = params['layers'][0]['wq'].shape[1]
    assert hidden == heads * dim_head
    mlp_hidden = params['layers'][0]['w1'].shape[1]
    L = len(params['layers'])
    m = params['motion']
    ch, dim_out = m['w1'].shape[1], m['w2'].shape[1]
    assert m['w1'].shape[0] == C, "MotionEncoder track_dim must equal C"
    assert pn2 % 8 == 0 and N % 8 == 0, "token counts must be sublane aligned"

    if batch_tile is None:
        batch_tile = max(d for d in range(1, min(B, 8) + 1) if B % d == 0)
    bt = batch_tile
    assert B % bt == 0
    n_btiles = B // bt
    f32, bf16 = jnp.float32, jnp.bfloat16
    scale = dim_head ** -0.5

    # ---- layout plumbing (wrapper side): 2-D row-major slabs ----
    kv2d = jnp.transpose(mc, (0, 3, 2, 1)).reshape(B * N, dim)            # b pn (t c)
    qinit2d = jnp.broadcast_to(query[None], (B, pn2, dim)).reshape(B * pn2, dim)

    # ---- fold LayerNorm affines (+ attention scale) into weights, fuse K|V ----
    def stack(fn, dtype):
        return jnp.stack([fn(p) for p in params['layers']], 0).astype(dtype)

    wq_s = stack(lambda p: scale * p['norm_g'][:, None] * p['wq'], bf16)
    bq_s = stack(lambda p: (scale * (p['norm_b'] @ p['wq']))[None, :], f32)
    wkv_s = stack(lambda p: jnp.concatenate(
        [p['cnorm_g'][:, None] * p['wk'], p['cnorm_g'][:, None] * p['wv']], 1), bf16)
    bkv_s = stack(lambda p: jnp.concatenate(
        [p['cnorm_b'] @ p['wk'], p['cnorm_b'] @ p['wv']])[None, :], f32)
    wo_s = stack(lambda p: p['wo'], bf16)
    bo_s = stack(lambda p: p['bo'][None, :], f32)
    w1_s = stack(lambda p: p['mnorm_g'][:, None] * p['w1'], bf16)
    b1_s = stack(lambda p: (p['mnorm_b'] @ p['w1'] + p['b1'])[None, :], f32)
    w2_s = stack(lambda p: p['w2'], bf16)
    b2_s = stack(lambda p: p['b2'][None, :], f32)

    # ---- MotionEncoder 1x1 convs as block-diagonal (t c) -> (t ch) matmuls ----
    eye_t = jnp.eye(T, dtype=f32)
    wm1 = jnp.kron(eye_t, m['w1']).astype(bf16)            # (T*C,  T*ch)
    bm1 = jnp.tile(m['b1'], (T,))[None, :].astype(f32)
    wm2 = jnp.kron(eye_t, m['w2']).astype(bf16)            # (T*ch, T*dim_out)
    bm2 = jnp.tile(m['b2'], (T,))[None, :].astype(f32)

    rq, rkv = bt * pn2, bt * N
    kernel = functools.partial(_motionq_kernel, bt=bt, pn2=pn2, n_kv=N,
                               heads=heads, dim_head=dim_head, hidden=hidden)
    per_layer3 = lambda i, l: (l, 0, 0)
    const2 = lambda i, l: (0, 0)
    per_batch2 = lambda i, l: (i, 0)

    q2d, enc2d = pl.pallas_call(
        kernel,
        out_shape=(jax.ShapeDtypeStruct((B * pn2, dim), f32),
                   jax.ShapeDtypeStruct((B * pn2, T * dim_out), f32)),
        grid=(n_btiles, L),
        in_specs=[
            pl.BlockSpec((rq, dim), per_batch2),              # query init
            pl.BlockSpec((rkv, dim), per_batch2),             # kv tokens
            pl.BlockSpec((1, dim, hidden), per_layer3),       # Wq (gamma+scale folded)
            pl.BlockSpec((1, 1, hidden), per_layer3),         # beta@Wq*scale
            pl.BlockSpec((1, dim, 2 * hidden), per_layer3),   # W[k|v] fused
            pl.BlockSpec((1, 1, 2 * hidden), per_layer3),
            pl.BlockSpec((1, hidden, dim), per_layer3),       # Wout
            pl.BlockSpec((1, 1, dim), per_layer3),
            pl.BlockSpec((1, dim, mlp_hidden), per_layer3),   # fc1 (norm folded)
            pl.BlockSpec((1, 1, mlp_hidden), per_layer3),
            pl.BlockSpec((1, mlp_hidden, dim), per_layer3),   # fc2
            pl.BlockSpec((1, 1, dim), per_layer3),
            pl.BlockSpec((dim, T * ch), const2),              # MotionEncoder conv1
            pl.BlockSpec((1, T * ch), const2),
            pl.BlockSpec((T * ch, T * dim_out), const2),      # MotionEncoder conv2
            pl.BlockSpec((1, T * dim_out), const2),
        ],
        out_specs=(pl.BlockSpec((rq, dim), per_batch2),
                   pl.BlockSpec((rq, T * dim_out), per_batch2)),
        scratch_shapes=[pltpu.VMEM((rq, dim), f32),           # running q state
                        pltpu.VMEM((rkv, dim), bf16)],        # LN(kv) cache (bf16)
        compiler_params=pltpu.CompilerParams(
            dimension_semantics=("parallel", "arbitrary")),
    )(qinit2d, kv2d, wq_s, bq_s, wkv_s, bkv_s, wo_s, bo_s,
      w1_s, b1_s, w2_s, b2_s, wm1, bm1, wm2, bm2)

    q4 = q2d.reshape(B, pn2, T, C)
    mc_out = jnp.transpose(q4, (0, 3, 2, 1))                  # b c t pn2
    enc4 = enc2d.reshape(B, pn2, T, dim_out)
    encoded = jnp.transpose(enc4, (0, 3, 2, 1))               # b dim_out t pn2
    return encoded, mc_out


# ----------------------------------------------------------------------------
# parameters + plain-JAX reference (f32) for a sanity check
# ----------------------------------------------------------------------------
def init_params(key, *, dim, heads, dim_head, pn_prime, mlp_hidden,
                num_layers, track_dim, dim_out, motion_layer_num=2):
    hidden = heads * dim_head
    keys = jax.random.split(key, 2 + num_layers)

    def lin(k, fan_in, shape):
        return jax.random.normal(k, shape, jnp.float32) / np.sqrt(fan_in)

    layers = []
    for li in range(num_layers):
        lk = jax.random.split(keys[2 + li], 14)
        layers.append(dict(
            norm_g=1.0 + 0.1 * jax.random.normal(lk[0], (dim,), jnp.float32),
            norm_b=0.05 * jax.random.normal(lk[1], (dim,), jnp.float32),
            cnorm_g=1.0 + 0.1 * jax.random.normal(lk[2], (dim,), jnp.float32),
            cnorm_b=0.05 * jax.random.normal(lk[3], (dim,), jnp.float32),
            wq=lin(lk[4], dim, (dim, hidden)),
            wk=lin(lk[5], dim, (dim, hidden)),
            wv=lin(lk[6], dim, (dim, hidden)),
            wo=lin(lk[7], hidden, (hidden, dim)),
            bo=0.02 * jax.random.normal(lk[8], (dim,), jnp.float32),
            mnorm_g=1.0 + 0.1 * jax.random.normal(lk[9], (dim,), jnp.float32),
            mnorm_b=0.05 * jax.random.normal(lk[10], (dim,), jnp.float32),
            w1=lin(lk[11], dim, (dim, mlp_hidden)),
            b1=0.02 * jax.random.normal(lk[12], (mlp_hidden,), jnp.float32),
            w2=lin(lk[13], mlp_hidden, (mlp_hidden, dim)),
            b2=jnp.zeros((dim,), jnp.float32),
        ))
    # MotionEncoder: Conv1d(track_dim->ch) ReLU, Conv1d(ch->dim_out) ReLU
    ch = dim_out // motion_layer_num
    assert min(ch * 2, dim_out) == dim_out  # TODO(synk): only the 2-conv chain is fused here
    mk = jax.random.split(keys[1], 4)
    motion = dict(w1=lin(mk[0], track_dim, (track_dim, ch)),
                  b1=0.02 * jax.random.normal(mk[1], (ch,), jnp.float32),
                  w2=lin(mk[2], ch, (ch, dim_out)),
                  b2=0.02 * jax.random.normal(mk[3], (dim_out,), jnp.float32))
    query = jax.random.normal(keys[0], (pn_prime, dim), jnp.float32)
    return dict(query=query, layers=layers, motion=motion)


def _ln_ref(x, g, b, eps=1e-5):
    mu = jnp.mean(x, axis=-1, keepdims=True)
    var = jnp.mean(jnp.square(x - mu), axis=-1, keepdims=True)
    return (x - mu) * jax.lax.rsqrt(var + eps) * g + b


def reference_forward(mc, params, *, heads, dim_head):
    B, C, T, N = mc.shape
    dim = T * C
    pn2 = params['query'].shape[0]
    kv = jnp.transpose(mc, (0, 3, 2, 1)).reshape(B, N, dim)
    q = jnp.broadcast_to(params['query'][None], (B, pn2, dim))
    scale = dim_head ** -0.5
    for p in params['layers']:
        xn = _ln_ref(q, p['norm_g'], p['norm_b'])
        cn = _ln_ref(kv, p['cnorm_g'], p['cnorm_b'])
        qh, kh, vh = xn @ p['wq'], cn @ p['wk'], cn @ p['wv']
        split = lambda t: t.reshape(t.shape[0], t.shape[1], heads, dim_head).transpose(0, 2, 1, 3)
        Q, K, V = split(qh), split(kh), split(vh)
        sim = jnp.einsum('bhid,bhjd->bhij', Q, K) * scale
        attn = jax.nn.softmax(sim, axis=-1)
        o = jnp.einsum('bhij,bhjd->bhid', attn, V)
        o = o.transpose(0, 2, 1, 3).reshape(B, pn2, heads * dim_head)
        q = q + (o @ p['wo'] + p['bo'])
        y = _ln_ref(q, p['mnorm_g'], p['mnorm_b'])
        h1 = jax.nn.gelu(y @ p['w1'] + p['b1'], approximate=True)
        q = q + (h1 @ p['w2'] + p['b2'])
    qr = q.reshape(B, pn2, T, C)
    mc_out = jnp.transpose(qr, (0, 3, 2, 1))
    m = params['motion']
    h = jnp.maximum(qr @ m['w1'] + m['b1'], 0.0)
    h = jnp.maximum(h @ m['w2'] + m['b2'], 0.0)
    return jnp.transpose(h, (0, 3, 2, 1)), mc_out


if __name__ == "__main__":
    # small shapes consistent with the module: mc = [B, C, T, N], dim = T*C
    B, C, T, N = 2, 4, 8, 16
    heads, dim_head = 2, 16          # hidden = 32
    pn_prime = 16
    dim = T * C                      # 32
    dim_out = 8
    lq_attn_num = 2
    mlp_ratio = 4.0

    key = jax.random.PRNGKey(0)
    kmc, kp = jax.random.split(key)
    mc = jax.random.normal(kmc, (B, C, T, N), jnp.float32)
    params = init_params(kp, dim=dim, heads=heads, dim_head=dim_head,
                         pn_prime=pn_prime, mlp_hidden=int(mlp_ratio * dim),
                         num_layers=lq_attn_num, track_dim=C, dim_out=dim_out)

    encoded, mc_out = motion_q_encoder(mc, params, heads=heads, dim_head=dim_head,
                                       use_attn=True)
    encoded, mc_out = jax.block_until_ready((encoded, mc_out))
    assert mc_out.shape == (B, C, T, pn_prime), mc_out.shape
    assert encoded.shape == (B, dim_out, T, pn_prime), encoded.shape
    assert bool(jnp.all(jnp.isfinite(mc_out))) and bool(jnp.all(jnp.isfinite(encoded)))

    # loose-tolerance parity vs f32 reference (kernel uses bf16 MXU operands
    # and approx reciprocal in softmax)
    enc_ref, mc_ref = reference_forward(mc, params, heads=heads, dim_head=dim_head)
    nerr = lambda a, b: float(jnp.max(jnp.abs(a - b)) / (jnp.max(jnp.abs(b)) + 1e-6))
    assert nerr(mc_out, mc_ref) < 0.1, nerr(mc_out, mc_ref)
    assert nerr(encoded, enc_ref) < 0.1, nerr(encoded, enc_ref)
    print("KERNEL_OK")
</pallas_src>

<mosaic_0001>
module attributes {stable_mosaic.version = 11 : i64} {
  func.func @_motionq_kernel(%arg0: i32, %arg1: i32, %arg2: memref<32x32xf32, #tpu.memory_space<vmem>>, %arg3: memref<32x32xf32, #tpu.memory_space<vmem>>, %arg4: memref<1x32x32xbf16, #tpu.memory_space<vmem>>, %arg5: memref<1x1x32xf32, #tpu.memory_space<vmem>>, %arg6: memref<1x32x64xbf16, #tpu.memory_space<vmem>>, %arg7: memref<1x1x64xf32, #tpu.memory_space<vmem>>, %arg8: memref<1x32x32xbf16, #tpu.memory_space<vmem>>, %arg9: memref<1x1x32xf32, #tpu.memory_space<vmem>>, %arg10: memref<1x32x128xbf16, #tpu.memory_space<vmem>>, %arg11: memref<1x1x128xf32, #tpu.memory_space<vmem>>, %arg12: memref<1x128x32xbf16, #tpu.memory_space<vmem>>, %arg13: memref<1x1x32xf32, #tpu.memory_space<vmem>>, %arg14: memref<32x32xbf16, #tpu.memory_space<vmem>>, %arg15: memref<1x32xf32, #tpu.memory_space<vmem>>, %arg16: memref<32x64xbf16, #tpu.memory_space<vmem>>, %arg17: memref<1x64xf32, #tpu.memory_space<vmem>>, %arg18: memref<32x32xf32, #tpu.memory_space<vmem>>, %arg19: memref<32x64xf32, #tpu.memory_space<vmem>>, %arg20: memref<32x32xf32, #tpu.memory_space<vmem>>, %arg21: memref<32x32xbf16, #tpu.memory_space<vmem>>) attributes {dimension_semantics = [#tpu.dimension_semantics<parallel>, #tpu.dimension_semantics<arbitrary>], iteration_bounds = array<i64: 1, 2>, scalar_prefetch = 0 : i64, scratch_operands = 2 : i64, tpu.core_type = #tpu.core_type<tc>, window_params = [{transform_indices = @transform_0, window_bounds = array<i64: 32, 32>}, {transform_indices = @transform_1, window_bounds = array<i64: 32, 32>}, {transform_indices = @transform_2, window_bounds = array<i64: 1, 32, 32>}, {transform_indices = @transform_3, window_bounds = array<i64: 1, 1, 32>}, {transform_indices = @transform_4, window_bounds = array<i64: 1, 32, 64>}, {transform_indices = @transform_5, window_bounds = array<i64: 1, 1, 64>}, {transform_indices = @transform_6, window_bounds = array<i64: 1, 32, 32>}, {transform_indices = @transform_7, window_bounds = array<i64: 1, 1, 32>}, {transform_indices = @transform_8, window_bounds = array<i64: 1, 32, 128>}, {transform_indices = @transform_9, window_bounds = array<i64: 1, 1, 128>}, {transform_indices = @transform_10, window_bounds = array<i64: 1, 128, 32>}, {transform_indices = @transform_11, window_bounds = array<i64: 1, 1, 32>}, {pipeline_mode = #tpu.pipeline_mode<synchronous>, transform_indices = @transform_12, window_bounds = array<i64: 32, 32>}, {pipeline_mode = #tpu.pipeline_mode<synchronous>, transform_indices = @transform_13, window_bounds = array<i64: 1, 32>}, {pipeline_mode = #tpu.pipeline_mode<synchronous>, transform_indices = @transform_14, window_bounds = array<i64: 32, 64>}, {pipeline_mode = #tpu.pipeline_mode<synchronous>, transform_indices = @transform_15, window_bounds = array<i64: 1, 64>}, {transform_indices = @transform_16, window_bounds = array<i64: 32, 32>}, {transform_indices = @transform_17, window_bounds = array<i64: 32, 64>}]} {
    %c0_i32 = arith.constant 0 : i32
    %0 = arith.cmpi eq, %arg1, %c0_i32 : i32
    %1 = arith.extui %0 : i1 to i32
    %c0_i32_0 = arith.constant 0 : i32
    %2 = arith.cmpi ne, %1, %c0_i32_0 : i32
    scf.if %2 {
      %c0_59 = arith.constant 0 : index
      %c0_60 = arith.constant 0 : index
      %135 = vector.load %arg2[%c0_59, %c0_60] : memref<32x32xf32, #tpu.memory_space<vmem>>, vector<32x32xf32>
      %c0_61 = arith.constant 0 : index
      %c0_62 = arith.constant 0 : index
      %136 = vector.load %arg20[%c0_61, %c0_62] : memref<32x32xf32, #tpu.memory_space<vmem>>, vector<32x32xf32>
      tpu.vector_store %arg20[%c0_61, %c0_62], %135 {strides = array<i32>} : memref<32x32xf32, #tpu.memory_space<vmem>>, vector<32x32xf32>,
      %c0_63 = arith.constant 0 : index
      %c0_64 = arith.constant 0 : index
      %137 = vector.load %arg3[%c0_63, %c0_64] : memref<32x32xf32, #tpu.memory_space<vmem>>, vector<32x32xf32>
      %cst_65 = arith.constant dense<0.000000e+00> : vector<32xf32>
      %138 = vector.multi_reduction <add>, %137, %cst_65 [1] : vector<32x32xf32> to vector<32xf32>
      %139 = vector.shape_cast %138 : vector<32xf32> to vector<32x1xf32>
      %cst_66 = arith.constant 3.200000e+01 : f32
      %140 = vector.broadcast %cst_66 : f32 to vector<32x1xf32>
      %141 = arith.divf %139, %140 : vector<32x1xf32>
      %142 = vector.broadcast %141 : vector<32x1xf32> to vector<32x32xf32>
      %143 = arith.subf %137, %142 : vector<32x32xf32>
      %144 = arith.mulf %143, %143 : vector<32x32xf32>
      %cst_67 = arith.constant dense<0.000000e+00> : vector<32xf32>
      %145 = vector.multi_reduction <add>, %144, %cst_67 [1] : vector<32x32xf32> to vector<32xf32>
      %146 = vector.shape_cast %145 : vector<32xf32> to vector<32x1xf32>
      %cst_68 = arith.constant 3.200000e+01 : f32
      %147 = vector.broadcast %cst_68 : f32 to vector<32x1xf32>
      %148 = arith.divf %146, %147 : vector<32x1xf32>
      %149 = vector.broadcast %141 : vector<32x1xf32> to vector<32x32xf32>
      %150 = arith.subf %137, %149 : vector<32x32xf32>
      %cst_69 = arith.constant 9.99999974E-6 : f32
      %151 = vector.broadcast %cst_69 : f32 to vector<32x1xf32>
      %152 = arith.addf %148, %151 : vector<32x1xf32>
      %153 = math.rsqrt %152 : vector<32x1xf32>
      %154 = vector.broadcast %153 : vector<32x1xf32> to vector<32x32xf32>
      %155 = arith.mulf %150, %154 : vector<32x32xf32>
      %156 = arith.truncf %155 : vector<32x32xf32> to vector<32x32xbf16>
      %c0_70 = arith.constant 0 : index
      %c0_71 = arith.constant 0 : index
      %157 = vector.load %arg21[%c0_70, %c0_71] : memref<32x32xbf16, #tpu.memory_space<vmem>>, vector<32x32xbf16>
      tpu.vector_store %arg21[%c0_70, %c0_71], %156 {strides = array<i32>} : memref<32x32xbf16, #tpu.memory_space<vmem>>, vector<32x32xbf16>,
    } else {
    }
    %c0 = arith.constant 0 : index
    %c0_1 = arith.constant 0 : index
    %3 = vector.load %arg20[%c0, %c0_1] : memref<32x32xf32, #tpu.memory_space<vmem>>, vector<32x32xf32>
    %c0_2 = arith.constant 0 : index
    %c0_3 = arith.constant 0 : index
    %4 = vector.load %arg21[%c0_2, %c0_3] : memref<32x32xbf16, #tpu.memory_space<vmem>>, vector<32x32xbf16>
    %cst = arith.constant dense<0.000000e+00> : vector<32xf32>
    %5 = vector.multi_reduction <add>, %3, %cst [1] : vector<32x32xf32> to vector<32xf32>
    %6 = vector.shape_cast %5 : vector<32xf32> to vector<32x1xf32>
    %cst_4 = arith.constant 3.200000e+01 : f32
    %7 = vector.broadcast %cst_4 : f32 to vector<32x1xf32>
    %8 = arith.divf %6, %7 : vector<32x1xf32>
    %9 = vector.broadcast %8 : vector<32x1xf32> to vector<32x32xf32>
    %10 = arith.subf %3, %9 : vector<32x32xf32>
    %11 = arith.mulf %10, %10 : vector<32x32xf32>
    %cst_5 = arith.constant dense<0.000000e+00> : vector<32xf32>
    %12 = vector.multi_reduction <add>, %11, %cst_5 [1] : vector<32x32xf32> to vector<32xf32>
    %13 = vector.shape_cast %12 : vector<32xf32> to vector<32x1xf32>
    %cst_6 = arith.constant 3.200000e+01 : f32
    %14 = vector.broadcast %cst_6 : f32 to vector<32x1xf32>
    %15 = arith.divf %13, %14 : vector<32x1xf32>
    %16 = vector.broadcast %8 : vector<32x1xf32> to vector<32x32xf32>
    %17 = arith.subf %3, %16 : vector<32x32xf32>
    %cst_7 = arith.constant 9.99999974E-6 : f32
    %18 = vector.broadcast %cst_7 : f32 to vector<32x1xf32>
    %19 = arith.addf %15, %18 : vector<32x1xf32>
    %20 = math.rsqrt %19 : vector<32x1xf32>
    %21 = vector.broadcast %20 : vector<32x1xf32> to vector<32x32xf32>
    %22 = arith.mulf %17, %21 : vector<32x32xf32>
    %23 = arith.truncf %22 : vector<32x32xf32> to vector<32x32xbf16>
    %c0_8 = arith.constant 0 : index
    %c0_9 = arith.constant 0 : index
    %c0_10 = arith.constant 0 : index
    %24 = vector.load %arg4[%c0_8, %c0_9, %c0_10] : memref<1x32x32xbf16, #tpu.memory_space<vmem>>, vector<1x32x32xbf16>
    %25 = vector.shape_cast %24 : vector<1x32x32xbf16> to vector<32x32xbf16>
    %cst_11 = arith.constant dense<0.000000e+00> : vector<32x32xf32>
    %26 = tpu.matmul %23, %25, %cst_11 {dimension_numbers = #tpu.dot_dimension_numbers<[1], [0], [0], [1], [0, 0, 1, 1], [], []>} : vector<32x32xbf16>, vector<32x32xbf16>, vector<32x32xf32> -> vector<32x32xf32>
    %c0_12 = arith.constant 0 : index
    %c0_13 = arith.constant 0 : index
    %c0_14 = arith.constant 0 : index
    %27 = vector.load %arg5[%c0_12, %c0_13, %c0_14] : memref<1x1x32xf32, #tpu.memory_space<vmem>>, vector<1x1x32xf32>
    %28 = vector.shape_cast %27 : vector<1x1x32xf32> to vector<1x32xf32>
    %29 = vector.broadcast %28 : vector<1x32xf32> to vector<32x32xf32>
    %30 = arith.addf %26, %29 : vector<32x32xf32>
    %c0_15 = arith.constant 0 : index
    %c0_16 = arith.constant 0 : index
    %c0_17 = arith.constant 0 : index
    %31 = vector.load %arg6[%c0_15, %c0_16, %c0_17] : memref<1x32x64xbf16, #tpu.memory_space<vmem>>, vector<1x32x64xbf16>
    %32 = vector.shape_cast %31 : vector<1x32x64xbf16> to vector<32x64xbf16>
    %cst_18 = arith.constant dense<0.000000e+00> : vector<32x64xf32>
    %33 = tpu.matmul %4, %32, %cst_18 {dimension_numbers = #tpu.dot_dimension_numbers<[1], [0], [0], [1], [0, 0, 1, 1], [], []>} : vector<32x32xbf16>, vector<32x64xbf16>, vector<32x64xf32> -> vector<32x64xf32>
    %c0_19 = arith.constant 0 : index
    %c0_20 = arith.constant 0 : index
    %c0_21 = arith.constant 0 : index
    %34 = vector.load %arg7[%c0_19, %c0_20, %c0_21] : memref<1x1x64xf32, #tpu.memory_space<vmem>>, vector<1x1x64xf32>
    %35 = vector.shape_cast %34 : vector<1x1x64xf32> to vector<1x64xf32>
    %36 = vector.broadcast %35 : vector<1x64xf32> to vector<32x64xf32>
    %37 = arith.addf %33, %36 : vector<32x64xf32>
    %38 = vector.extract_strided_slice %30 {offsets = [0, 0], sizes = [32, 16], strides = [1, 1]} : vector<32x32xf32> to vector<32x16xf32>
    %39 = vector.shape_cast %38 : vector<32x16xf32> to vector<2x16x16xf32>
    %40 = vector.extract_strided_slice %30 {offsets = [0, 16], sizes = [32, 16], strides = [1, 1]} : vector<32x32xf32> to vector<32x16xf32>
    %41 = vector.shape_cast %40 : vector<32x16xf32> to vector<2x16x16xf32>
    %42 = tpu.concatenate %39, %41 in 0 : vector<2x16x16xf32>, vector<2x16x16xf32> -> vector<4x16x16xf32>
    %43 = arith.truncf %42 : vector<4x16x16xf32> to vector<4x16x16xbf16>
    %44 = vector.extract_strided_slice %37 {offsets = [0, 0], sizes = [32, 16], strides = [1, 1]} : vector<32x64xf32> to vector<32x16xf32>
    %45 = vector.shape_cast %44 : vector<32x16xf32> to vector<2x16x16xf32>
    %46 = vector.extract_strided_slice %37 {offsets = [0, 16], sizes = [32, 16], strides = [1, 1]} : vector<32x64xf32> to vector<32x16xf32>
    %47 = vector.shape_cast %46 : vector<32x16xf32> to vector<2x16x16xf32>
    %48 = tpu.concatenate %45, %47 in 0 : vector<2x16x16xf32>, vector<2x16x16xf32> -> vector<4x16x16xf32>
    %49 = arith.truncf %48 : vector<4x16x16xf32> to vector<4x16x16xbf16>
    %50 = vector.extract_strided_slice %37 {offsets = [0, 32], sizes = [32, 16], strides = [1, 1]} : vector<32x64xf32> to vector<32x16xf32>
    %51 = vector.shape_cast %50 : vector<32x16xf32> to vector<2x16x16xf32>
    %52 = vector.extract_strided_slice %37 {offsets = [0, 48], sizes = [32, 16], strides = [1, 1]} : vector<32x64xf32> to vector<32x16xf32>
    %53 = vector.shape_cast %52 : vector<32x16xf32> to vector<2x16x16xf32>
    %54 = tpu.concatenate %51, %53 in 0 : vector<2x16x16xf32>, vector<2x16x16xf32> -> vector<4x16x16xf32>
    %55 = arith.truncf %54 : vector<4x16x16xf32> to vector<4x16x16xbf16>
    "tpu.trace_start"() <{level = 10 : i32, message = "gid,gjd->gij"}> : () -> ()
    %cst_22 = arith.constant dense<0.000000e+00> : vector<4x16x16xf32>
    %56 = tpu.matmul %43, %49, %cst_22 {dimension_numbers = #tpu.dot_dimension_numbers<[2], [2], [1], [1], [0, 0, 0, 1, 1, 1], [0], [0]>} : vector<4x16x16xbf16>, vector<4x16x16xbf16>, vector<4x16x16xf32> -> vector<4x16x16xf32>
    "tpu.trace_stop"() : () -> ()
    %cst_23 = arith.constant dense<0xFF800000> : vector<4x16xf32>
    %57 = vector.multi_reduction <maximumf>, %56, %cst_23 [2] : vector<4x16x16xf32> to vector<4x16xf32>
    %58 = vector.shape_cast %57 : vector<4x16xf32> to vector<4x16x1xf32>
    %59 = vector.broadcast %58 : vector<4x16x1xf32> to vector<4x16x16xf32>
    %60 = arith.subf %56, %59 : vector<4x16x16xf32>
    %61 = math.exp %60 : vector<4x16x16xf32>
    %cst_24 = arith.constant dense<0.000000e+00> : vector<4x16xf32>
    %62 = vector.multi_reduction <add>, %61, %cst_24 [2] : vector<4x16x16xf32> to vector<4x16xf32>
    %63 = vector.shape_cast %62 : vector<4x16xf32> to vector<4x16x1xf32>
    %64 = arith.truncf %61 : vector<4x16x16xf32> to vector<4x16x16xbf16>
    "tpu.trace_start"() <{level = 10 : i32, message = "gij,gjd->gid"}> : () -> ()
    %cst_25 = arith.constant dense<0.000000e+00> : vector<4x16x16xf32>
    %65 = tpu.matmul %64, %55, %cst_25 {dimension_numbers = #tpu.dot_dimension_numbers<[2], [1], [1], [2], [0, 0, 0, 1, 1, 2], [0], [0]>} : vector<4x16x16xbf16>, vector<4x16x16xbf16>, vector<4x16x16xf32> -> vector<4x16x16xf32>
    "tpu.trace_stop"() : () -> ()
    %66 = tpu.reciprocal %63 {approx = true} : vector<4x16x1xf32> -> vector<4x16x1xf32>
    %67 = vector.broadcast %66 : vector<4x16x1xf32> to vector<4x16x16xf32>
    %68 = arith.mulf %65, %67 : vector<4x16x16xf32>
    %69 = vector.extract_strided_slice %68 {offsets = [0, 0, 0], sizes = [2, 16, 16], strides = [1, 1, 1]} : vector<4x16x16xf32> to vector<2x16x16xf32>
    %70 = vector.shape_cast %69 : vector<2x16x16xf32> to vector<32x16xf32>
    %71 = vector.extract_strided_slice %68 {offsets = [2, 0, 0], sizes = [2, 16, 16], strides = [1, 1, 1]} : vector<4x16x16xf32> to vector<2x16x16xf32>
    %72 = vector.shape_cast %71 : vector<2x16x16xf32> to vector<32x16xf32>
    %73 = tpu.concatenate %70, %72 in 1 : vector<32x16xf32>, vector<32x16xf32> -> vector<32x32xf32>
    %74 = arith.truncf %73 : vector<32x32xf32> to vector<32x32xbf16>
    %c0_26 = arith.constant 0 : index
    %c0_27 = arith.constant 0 : index
    %c0_28 = arith.constant 0 : index
    %75 = vector.load %arg8[%c0_26, %c0_27, %c0_28] : memref<1x32x32xbf16, #tpu.memory_space<vmem>>, vector<1x32x32xbf16>
    %76 = vector.shape_cast %75 : vector<1x32x32xbf16> to vector<32x32xbf16>
    %cst_29 = arith.constant dense<0.000000e+00> : vector<32x32xf32>
    %77 = tpu.matmul %74, %76, %cst_29 {dimension_numbers = #tpu.dot_dimension_numbers<[1], [0], [0], [1], [0, 0, 1, 1], [], []>} : vector<32x32xbf16>, vector<32x32xbf16>, vector<32x32xf32> -> vector<32x32xf32>
    %c0_30 = arith.constant 0 : index
    %c0_31 = arith.constant 0 : index
    %c0_32 = arith.constant 0 : index
    %78 = vector.load %arg9[%c0_30, %c0_31, %c0_32] : memref<1x1x32xf32, #tpu.memory_space<vmem>>, vector<1x1x32xf32>
    %79 = vector.shape_cast %78 : vector<1x1x32xf32> to vector<1x32xf32>
    %80 = vector.broadcast %79 : vector<1x32xf32> to vector<32x32xf32>
    %81 = arith.addf %77, %80 : vector<32x32xf32>
    %82 = arith.addf %3, %81 : vector<32x32xf32>
    %cst_33 = arith.constant dense<0.000000e+00> : vector<32xf32>
    %83 = vector.multi_reduction <add>, %82, %cst_33 [1] : vector<32x32xf32> to vector<32xf32>
    %84 = vector.shape_cast %83 : vector<32xf32> to vector<32x1xf32>
    %cst_34 = arith.constant 3.200000e+01 : f32
    %85 = vector.broadcast %cst_34 : f32 to vector<32x1xf32>
    %86 = arith.divf %84, %85 : vector<32x1xf32>
    %87 = vector.broadcast %86 : vector<32x1xf32> to vector<32x32xf32>
    %88 = arith.subf %82, %87 : vector<32x32xf32>
    %89 = arith.mulf %88, %88 : vector<32x32xf32>
    %cst_35 = arith.constant dense<0.000000e+00> : vector<32xf32>
    %90 = vector.multi_reduction <add>, %89, %cst_35 [1] : vector<32x32xf32> to vector<32xf32>
    %91 = vector.shape_cast %90 : vector<32xf32> to vector<32x1xf32>
    %cst_36 = arith.constant 3.200000e+01 : f32
    %92 = vector.broadcast %cst_36 : f32 to vector<32x1xf32>
    %93 = arith.divf %91, %92 : vector<32x1xf32>
    %94 = vector.broadcast %86 : vector<32x1xf32> to vector<32x32xf32>
    %95 = arith.subf %82, %94 : vector<32x32xf32>
    %cst_37 = arith.constant 9.99999974E-6 : f32
    %96 = vector.broadcast %cst_37 : f32 to vector<32x1xf32>
    %97 = arith.addf %93, %96 : vector<32x1xf32>
    %98 = math.rsqrt %97 : vector<32x1xf32>
    %99 = vector.broadcast %98 : vector<32x1xf32> to vector<32x32xf32>
    %100 = arith.mulf %95, %99 : vector<32x32xf32>
    %101 = arith.truncf %100 : vector<32x32xf32> to vector<32x32xbf16>
    %c0_38 = arith.constant 0 : index
    %c0_39 = arith.constant 0 : index
    %c0_40 = arith.constant 0 : index
    %102 = vector.load %arg10[%c0_38, %c0_39, %c0_40] : memref<1x32x128xbf16, #tpu.memory_space<vmem>>, vector<1x32x128xbf16>
    %103 = vector.shape_cast %102 : vector<1x32x128xbf16> to vector<32x128xbf16>
    %cst_41 = arith.constant dense<0.000000e+00> : vector<32x128xf32>
    %104 = tpu.matmul %101, %103, %cst_41 {dimension_numbers = #tpu.dot_dimension_numbers<[1], [0], [0], [1], [0, 0, 1, 1], [], []>} : vector<32x32xbf16>, vector<32x128xbf16>, vector<32x128xf32> -> vector<32x128xf32>
    %c0_42 = arith.constant 0 : index
    %c0_43 = arith.constant 0 : index
    %c0_44 = arith.constant 0 : index
    %105 = vector.load %arg11[%c0_42, %c0_43, %c0_44] : memref<1x1x128xf32, #tpu.memory_space<vmem>>, vector<1x1x128xf32>
    %106 = vector.shape_cast %105 : vector<1x1x128xf32> to vector<1x128xf32>
    %107 = vector.broadcast %106 : vector<1x128xf32> to vector<32x128xf32>
    %108 = arith.addf %104, %107 : vector<32x128xf32>
    %109 = arith.mulf %108, %108 : vector<32x128xf32>
    %110 = arith.mulf %108, %109 : vector<32x128xf32>
    %cst_45 = arith.constant 4.471500e-02 : f32
    %111 = vector.broadcast %cst_45 : f32 to vector<32x128xf32>
    %112 = arith.mulf %111, %110 : vector<32x128xf32>
    %113 = arith.addf %108, %112 : vector<32x128xf32>
    %cst_46 = arith.constant 0.797884583 : f32
    %114 = vector.broadcast %cst_46 : f32 to vector<32x128xf32>
    %115 = arith.mulf %114, %113 : vector<32x128xf32>
    %116 = math.tanh %115 : vector<32x128xf32>
    %cst_47 = arith.constant 1.000000e+00 : f32
    %117 = vector.broadcast %cst_47 : f32 to vector<32x128xf32>
    %118 = arith.addf %117, %116 : vector<32x128xf32>
    %cst_48 = arith.constant 5.000000e-01 : f32
    %119 = vector.broadcast %cst_48 : f32 to vector<32x128xf32>
    %120 = arith.mulf %119, %118 : vector<32x128xf32>
    %121 = arith.mulf %108, %120 : vector<32x128xf32>
    %122 = arith.truncf %121 : vector<32x128xf32> to vector<32x128xbf16>
    %c0_49 = arith.constant 0 : index
    %c0_50 = arith.constant 0 : index
    %c0_51 = arith.constant 0 : index
    %123 = vector.load %arg12[%c0_49, %c0_50, %c0_51] : memref<1x128x32xbf16, #tpu.memory_space<vmem>>, vector<1x128x32xbf16>
    %124 = vector.shape_cast %123 : vector<1x128x32xbf16> to vector<128x32xbf16>
    %cst_52 = arith.constant dense<0.000000e+00> : vector<32x32xf32>
    %125 = tpu.matmul %122, %124, %cst_52 {dimension_numbers = #tpu.dot_dimension_numbers<[1], [0], [0], [1], [0, 0, 1, 1], [], []>} : vector<32x128xbf16>, vector<128x32xbf16>, vector<32x32xf32> -> vector<32x32xf32>
    %c0_53 = arith.constant 0 : index
    %c0_54 = arith.constant 0 : index
    %c0_55 = arith.constant 0 : index
    %126 = vector.load %arg13[%c0_53, %c0_54, %c0_55] : memref<1x1x32xf32, #tpu.memory_space<vmem>>, vector<1x1x32xf32>
    %127 = vector.shape_cast %126 : vector<1x1x32xf32> to vector<1x32xf32>
    %128 = vector.broadcast %127 : vector<1x32xf32> to vector<32x32xf32>
    %129 = arith.addf %125, %128 : vector<32x32xf32>
    %130 = arith.addf %82, %129 : vector<32x32xf32>
    %c0_56 = arith.constant 0 : index
    %c0_57 = arith.constant 0 : index
    %131 = vector.load %arg20[%c0_56, %c0_57] : memref<32x32xf32, #tpu.memory_space<vmem>>, vector<32x32xf32>
    tpu.vector_store %arg20[%c0_56, %c0_57], %130 {strides = array<i32>} : memref<32x32xf32, #tpu.memory_space<vmem>>, vector<32x32xf32>,
    %c1_i32 = arith.constant 1 : i32
    %132 = arith.cmpi eq, %arg1, %c1_i32 : i32
    %133 = arith.extui %132 : i1 to i32
    %c0_i32_58 = arith.constant 0 : i32
    %134 = arith.cmpi ne, %133, %c0_i32_58 : i32
    scf.if %134 {
      %c0_59 = arith.constant 0 : index
      %c0_60 = arith.constant 0 : index
      %135 = vector.load %arg18[%c0_59, %c0_60] : memref<32x32xf32, #tpu.memory_space<vmem>>, vector<32x32xf32>
      tpu.vector_store %arg18[%c0_59, %c0_60], %130 {strides = array<i32>} : memref<32x32xf32, #tpu.memory_space<vmem>>, vector<32x32xf32>,
      %136 = arith.truncf %130 : vector<32x32xf32> to vector<32x32xbf16>
      %c0_61 = arith.constant 0 : index
      %c0_62 = arith.constant 0 : index
      %137 = vector.load %arg14[%c0_61, %c0_62] : memref<32x32xbf16, #tpu.memory_space<vmem>>, vector<32x32xbf16>
      %cst_63 = arith.constant dense<0.000000e+00> : vector<32x32xf32>
      %138 = tpu.matmul %136, %137, %cst_63 {dimension_numbers = #tpu.dot_dimension_numbers<[1], [0], [0], [1], [0, 0, 1, 1], [], []>} : vector<32x32xbf16>, vector<32x32xbf16>, vector<32x32xf32> -> vector<32x32xf32>
      %c0_64 = arith.constant 0 : index
      %c0_65 = arith.constant 0 : index
      %139 = vector.load %arg15[%c0_64, %c0_65] : memref<1x32xf32, #tpu.memory_space<vmem>>, vector<1x32xf32>
      %140 = vector.broadcast %139 : vector<1x32xf32> to vector<32x32xf32>
      %141 = arith.addf %138, %140 : vector<32x32xf32>
      %cst_66 = arith.constant 0.000000e+00 : f32
      %142 = vector.broadcast %cst_66 : f32 to vector<32x32xf32>
      %143 = arith.maximumf %141, %142 : vector<32x32xf32>
      %144 = arith.truncf %143 : vector<32x32xf32> to vector<32x32xbf16>
      %c0_67 = arith.constant 0 : index
      %c0_68 = arith.constant 0 : index
      %145 = vector.load %arg16[%c0_67, %c0_68] : memref<32x64xbf16, #tpu.memory_space<vmem>>, vector<32x64xbf16>
      %cst_69 = arith.constant dense<0.000000e+00> : vector<32x64xf32>
      %146 = tpu.matmul %144, %145, %cst_69 {dimension_numbers = #tpu.dot_dimension_numbers<[1], [0], [0], [1], [0, 0, 1, 1], [], []>} : vector<32x32xbf16>, vector<32x64xbf16>, vector<32x64xf32> -> vector<32x64xf32>
      %c0_70 = arith.constant 0 : index
      %c0_71 = arith.constant 0 : index
      %147 = vector.load %arg17[%c0_70, %c0_71] : memref<1x64xf32, #tpu.memory_space<vmem>>, vector<1x64xf32>
      %148 = vector.broadcast %147 : vector<1x64xf32> to vector<32x64xf32>
      %149 = arith.addf %146, %148 : vector<32x64xf32>
      %cst_72 = arith.constant 0.000000e+00 : f32
      %150 = vector.broadcast %cst_72 : f32 to vector<32x64xf32>
      %151 = arith.maximumf %149, %150 : vector<32x64xf32>
      %c0_73 = arith.constant 0 : index
      %c0_74 = arith.constant 0 : index
      %152 = vector.load %arg19[%c0_73, %c0_74] : memref<32x64xf32, #tpu.memory_space<vmem>>, vector<32x64xf32>
      tpu.vector_store %arg19[%c0_73, %c0_74], %151 {strides = array<i32>} : memref<32x64xf32, #tpu.memory_space<vmem>>, vector<32x64xf32>,
    } else {
    }
    return
  }
  func.func @transform_0(%arg0: i32, %arg1: i32) -> (i32, i32) {
    %c0_i32 = arith.constant 0 : i32
    %c0_i32_0 = arith.constant 0 : i32
    return %arg0, %c0_i32 : i32, i32
  }
  func.func @transform_1(%arg0: i32, %arg1: i32) -> (i32, i32) {
    %c0_i32 = arith.constant 0 : i32
    %c0_i32_0 = arith.constant 0 : i32
    return %arg0, %c0_i32 : i32, i32
  }
  func.func @transform_2(%arg0: i32, %arg1: i32) -> (i32, i32, i32) {
    %c0_i32 = arith.constant 0 : i32
    %c0_i32_0 = arith.constant 0 : i32
    %c0_i32_1 = arith.constant 0 : i32
    return %arg1, %c0_i32, %c0_i32_0 : i32, i32, i32
  }
  func.func @transform_3(%arg0: i32, %arg1: i32) -> (i32, i32, i32) {
    %c0_i32 = arith.constant 0 : i32
    %c0_i32_0 = arith.constant 0 : i32
    %c0_i32_1 = arith.constant 0 : i32
    return %arg1, %c0_i32, %c0_i32_0 : i32, i32, i32
  }
  func.func @transform_4(%arg0: i32, %arg1: i32) -> (i32, i32, i32) {
    %c0_i32 = arith.constant 0 : i32
    %c0_i32_0 = arith.constant 0 : i32
    %c0_i32_1 = arith.constant 0 : i32
    return %arg1, %c0_i32, %c0_i32_0 : i32, i32, i32
  }
  func.func @transform_5(%arg0: i32, %arg1: i32) -> (i32, i32, i32) {
    %c0_i32 = arith.constant 0 : i32
    %c0_i32_0 = arith.constant 0 : i32
    %c0_i32_1 = arith.constant 0 : i32
    return %arg1, %c0_i32, %c0_i32_0 : i32, i32, i32
  }
  func.func @transform_6(%arg0: i32, %arg1: i32) -> (i32, i32, i32) {
    %c0_i32 = arith.constant 0 : i32
    %c0_i32_0 = arith.constant 0 : i32
    %c0_i32_1 = arith.constant 0 : i32
    return %arg1, %c0_i32, %c0_i32_0 : i32, i32, i32
  }
  func.func @transform_7(%arg0: i32, %arg1: i32) -> (i32, i32, i32) {
    %c0_i32 = arith.constant 0 : i32
    %c0_i32_0 = arith.constant 0 : i32
    %c0_i32_1 = arith.constant 0 : i32
    return %arg1, %c0_i32, %c0_i32_0 : i32, i32, i32
  }
  func.func @transform_8(%arg0: i32, %arg1: i32) -> (i32, i32, i32) {
    %c0_i32 = arith.constant 0 : i32
    %c0_i32_0 = arith.constant 0 : i32
    %c0_i32_1 = arith.constant 0 : i32
    return %arg1, %c0_i32, %c0_i32_0 : i32, i32, i32
  }
  func.func @transform_9(%arg0: i32, %arg1: i32) -> (i32, i32, i32) {
    %c0_i32 = arith.constant 0 : i32
    %c0_i32_0 = arith.constant 0 : i32
    %c0_i32_1 = arith.constant 0 : i32
    return %arg1, %c0_i32, %c0_i32_0 : i32, i32, i32
  }
  func.func @transform_10(%arg0: i32, %arg1: i32) -> (i32, i32, i32) {
    %c0_i32 = arith.constant 0 : i32
    %c0_i32_0 = arith.constant 0 : i32
    %c0_i32_1 = arith.constant 0 : i32
    return %arg1, %c0_i32, %c0_i32_0 : i32, i32, i32
  }
  func.func @transform_11(%arg0: i32, %arg1: i32) -> (i32, i32, i32) {
    %c0_i32 = arith.constant 0 : i32
    %c0_i32_0 = arith.constant 0 : i32
    %c0_i32_1 = arith.constant 0 : i32
    return %arg1, %c0_i32, %c0_i32_0 : i32, i32, i32
  }
  func.func @transform_12(%arg0: i32, %arg1: i32) -> (i32, i32) {
    %c0_i32 = arith.constant 0 : i32
    %c0_i32_0 = arith.constant 0 : i32
    %c0_i32_1 = arith.constant 0 : i32
    return %c0_i32, %c0_i32_0 : i32, i32
  }
  func.func @transform_13(%arg0: i32, %arg1: i32) -> (i32, i32) {
    %c0_i32 = arith.constant 0 : i32
    %c0_i32_0 = arith.constant 0 : i32
    %c0_i32_1 = arith.constant 0 : i32
    return %c0_i32, %c0_i32_0 : i32, i32
  }
  func.func @transform_14(%arg0: i32, %arg1: i32) -> (i32, i32) {
    %c0_i32 = arith.constant 0 : i32
    %c0_i32_0 = arith.constant 0 : i32
    %c0_i32_1 = arith.constant 0 : i32
    return %c0_i32, %c0_i32_0 : i32, i32
  }
  func.func @transform_15(%arg0: i32, %arg1: i32) -> (i32, i32) {
    %c0_i32 = arith.constant 0 : i32
    %c0_i32_0 = arith.constant 0 : i32
    %c0_i32_1 = arith.constant 0 : i32
    return %c0_i32, %c0_i32_0 : i32, i32
  }
  func.func @transform_16(%arg0: i32, %arg1: i32) -> (i32, i32) {
    %c0_i32 = arith.constant 0 : i32
    %c0_i32_0 = arith.constant 0 : i32
    return %arg0, %c0_i32 : i32, i32
  }
  func.func @transform_17(%arg0: i32, %arg1: i32) -> (i32, i32) {
    %c0_i32 = arith.constant 0 : i32
    %c0_i32_0 = arith.constant 0 : i32
    return %arg0, %c0_i32 : i32, i32
  }
}

</mosaic_0001>

<bundles_post_ra>
// kernel: tpu_custom_call.1
= control target key start
LH: loop header
LB: loop body
LE: loop exit
PB: predicated region body
PF: predicated region fallthrough
CT: control target
= control target key end

     0   :  { %s3914_s0 = inlined_call_operand.vmem [shape: f32[32,32], index: 0, kind: input, shape index: {}]   ;;  %s3915_s1 = inlined_call_operand.vmem [shape: f32[32,32], index: 1, kind: input, shape index: {}]   ;;  %s3916_s2 = inlined_call_operand.vmem [shape: bf16[2,32,32], index: 2, kind: input, shape index: {}]   ;;  %s3917_s3 = inlined_call_operand.hbm [shape: f32[2,1,32], index: 3, kind: input, shape index: {}]   ;;  %s3918_s4 = inlined_call_operand.vmem [shape: bf16[2,32,64], index: 4, kind: input, shape index: {}]   ;;  %s3919_s5 = inlined_call_operand.hbm [shape: f32[2,1,64], index: 5, kind: input, shape index: {}]   ;;  %s3920_s6 = inlined_call_operand.vmem [shape: bf16[2,32,32], index: 6, kind: input, shape index: {}]   ;;  %s3921_s7 = inlined_call_operand.hbm [shape: f32[2,1,32], index: 7, kind: input, shape index: {}]   ;;  %s3922_s8 = inlined_call_operand.hbm [shape: bf16[2,32,128], index: 8, kind: input, shape index: {}]   ;;  %s3923_s9 = inlined_call_operand.hbm [shape: f32[2,1,128], index: 9, kind: input, shape index: {}]   ;;  %s3924_s10 = inlined_call_operand.vmem [shape: bf16[2,128,32], index: 10, kind: input, shape index: {}]   ;;  %s3925_s11 = inlined_call_operand.vmem [shape: f32[2,1,32], index: 11, kind: input, shape index: {}]   ;;  %s3926_s12 = inlined_call_operand.vmem [shape: bf16[32,32], index: 12, kind: input, shape index: {}]   ;;  %s3927_s13 = inlined_call_operand.vmem [shape: f32[1,32], index: 13, kind: input, shape index: {}]   ;;  %s3928_s14 = inlined_call_operand.hbm [shape: bf16[32,64], index: 14, kind: input, shape index: {}]   ;;  %s3929_s15 = inlined_call_operand.vmem [shape: f32[1,64], index: 15, kind: input, shape index: {}]   ;;  %s3930_s16 = inlined_call_operand.hbm [shape: f32[32,32], index: 16, kind: output, shape index: {0}]   ;;  %s3931_s17 = inlined_call_operand.hbm [shape: f32[32,64], index: 17, kind: output, shape index: {1}]  }
   0x1   :  { %3939 = sst [smem:[#allocation27_spill]] %s3914_s0 }
   0x2   :  { %3940 = sst [smem:[#allocation28_spill]] %s3915_s1 }
   0x3   :  { %3941 = sst [smem:[#allocation29_spill]] %s3916_s2 }
   0x4   :  { %3942 = sst [smem:[#allocation30_spill]] %s3917_s3 }
   0x5   :  { %3943 = sst [smem:[#allocation31_spill]] %s3919_s5 }
   0x6   :  { %3944 = sst [smem:[#allocation32_spill]] %s3920_s6 }
   0x7   :  { %3945 = sst [smem:[#allocation33_spill]] %s3922_s8 }
   0x8   :  { %3946 = sst [smem:[#allocation34_spill]] %s3924_s10 }
   0x9   :  { %3947 = sst [smem:[#allocation35_spill]] %s3925_s11 }
   0xa   :  { %3948 = sst [smem:[#allocation36_spill]] %s3926_s12 }
   0xb   :  { %3949 = sst [smem:[#allocation37_spill]] %s3927_s13 }
   0xc   :  { %3950 = sst [smem:[#allocation38_spill]] %s3929_s15 }
   0xd   :  { %3951 = sst [smem:[#allocation39_spill]] %s3930_s16 }
   0xe   :  { %3952 = sst [smem:[#allocation40_spill]] %s3931_s17 }
   0xf   :  { %23 = vsyncpa [#allocation5], 0 }
  0x10   :  { %25 = vsyncpa [#allocation5 + $0x1], 0 }
  0x11   :  { %26 = vsyncpa [#allocation8], 0 }
  0x12   :  { %28 = vsyncpa [#allocation8 + $0x1], 0 }
  0x13   :  { %29 = vsyncpa [#allocation11], 0 }
  0x14   :  { %31 = vsyncpa [#allocation11 + $0x1], 0 }
  0x15   :  { %32 = vsyncpa [#allocation14], 0 }
  0x16   :  { %33 = vsyncpa [#allocation6], 0 }
  0x17   :  { %34 = vsyncpa [#allocation17], 0  ;;  %s3430_s24 = smov 0   ;;  %s3432_s25 = smov 0  }
  0x18   :  { %s3434_s26 = smov 0   ;;  %s3436_s27 = smov 0  }
  0x19   :  { %s3438_s28 = smov 0   ;;  %s3440_s29 = smov 0  }
  0x1a LB: > { %3953 = sst [smem:[#allocation24_spill]] %s3309_s26  ;;  %s49_s0 = sadd.s32 1, %s3317_s28  ;;  %s3321_s29 = sphi %s3440_s29, %s40_s29   ;;  %s3317_s28 = sphi %s3438_s28, %s3990_s28   ;;  %s3313_s27 = sphi %s3436_s27, %s3989_s27   ;;  %s3309_s26 = sphi %s3434_s26, %s3985_s26   ;;  %s3305_s25 = sphi %s3432_s25, %s3988_s25   ;;  %s3301_s24 = sphi %s3430_s24, %s3987_s24  }
  0x1b   : > { %s137_s30 = sadd.s32 1, %s3309_s26  ;;  %p50_p0 = scmp.ge.s32.totalorder %s49_s0, 2 }
  0x1c   : > { %p144_p1 = scmp.ne.s32.totalorder %s3309_s26, %s3305_s25  ;;  %p145_p2 = scmp.eq.s32.totalorder %s3321_s29, 0 }
  0x1d   : > { %s3992_s0 = smov (%p50_p0, %s49_s0), 0  ;;  %p2855_p4 = scmp.lt.s32.totalorder %s3321_s29, 2 }
  0x1e   : > { %3954 = sst [smem:[#allocation25_spill]] %s3992_s0  ;;  %p146_p3 = por %p145_p2, %p144_p1 }
  0x1f   : > { %s134_s18 = ssub.s32 %s3317_s28, %s3992_s0  ;;  %s3471_s19 = sand.u32 1, %s3309_s26  }
  0x20   : > { %p135_p5 = scmp.eq.s32.totalorder %s134_s18, 0  ;;  %s3474_s1 = sshll.u32 %s3317_s28, 4 }
  0x21   : > { %p3476_p6 = pnand %p2855_p4, %p146_p3  ;;  %s591_s21 = sand.u32 1, %s3321_s29  }
  0x22   : > { %s3482_s22 = scalar_select %p135_p5, %s3309_s26, %s137_s30  }
  0x23   : > { %s3957_s5 = sld [smem:[#allocation31_spill]]  ;;  %s594_s0 = scalar_lea.vmem [#allocation7], %s3471_s19 }
  0x24   : > { %3956 = sst [smem:[#allocation26_spill]] %s3482_s22  ;;  %s601_s15 = sshll.u32 %s594_s0, 4  ;;  %s602_s15 = int_to_ptr.vmem [resolvable:$true] %s601_s15 }
  0x25   : > { %s3489_s13 = scalar_lea.sflag [#allocation8], %s591_s21  ;;  %p3493_p7 = pneg %p3476_p6 }
  0x26   : > { %s3050_s12 = scalar_lea.vmem %s602_s15, 16  ;;  %s3323_s30 = smov [#allocation7]  }
  0x27   : > { %p3051_p8 = scmp.ne.s32.totalorder %s602_s15, %s3050_s12  ;;  %s3055_s22 = sshll.u32 %s3323_s30, 4  ;;  %s3056_s22 = int_to_ptr.vmem [resolvable:$false] %s3055_s22 }
  0x28   : > { %s3057_s17 = scalar_lea.vmem %s3056_s22, 32  ;;  %p3058_p11 = scmp.lt.s32.totalorder %s602_s15, %s3056_s22 }
  0x29   : > { %s599_s16 = scalar_lea.hbm %s3957_s5, %s3474_s1  ;;  %p3053_p9 = pnand %p3051_p8, %p3493_p7 }
  0x2a   : > { %p3059_p12 = scmp.lt.s32.totalorder %s3057_s17, %s3050_s12 }
  0x2b   : > { %p3054_p10 = pneg %p3053_p9 }
  0x2c   : > { %p3060_p13 = por %p3059_p12, %p3058_p11 }
  0x2e   : > { %p3061_p0 = pnand %p3060_p13, %p3054_p10 }
  0x30   : > { %3064 = shalt.err (!%p3061_p0)
}
  0x31   : > { %2844 = dma.hbm_to_vmem [thread:$0]  (!%p3476_p6), %s599_s16, 16, %s602_s15, %s3489_s13  }
  0x32   : > { %s2561_s0 = sshll.u32 %s3471_s19, 4  ;;  %s2637_s23 = sshll.u32 %s3317_s28, 8 }
  0x33   : > { %s3959_s8 = sld [smem:[#allocation33_spill]]  ;;  %s637_s11 = scalar_lea.vmem [#allocation10], %s2561_s0 }
  0x34   : > { %s644_s10 = sshll.u32 %s637_s11, 4  ;;  %s3507_s12 = scalar_lea.sflag [#allocation11], %s591_s21  ;;  %s645_s10 = int_to_ptr.vmem [resolvable:$true] %s644_s10 }
  0x35   : > { %s3078_s22 = scalar_lea.vmem %s645_s10, 256  ;;  %s3324_s17 = smov [#allocation10]  }
  0x36   : > { %p3079_p1 = scmp.ne.s32.totalorder %s645_s10, %s3078_s22  ;;  %s3083_s6 = sshll.u32 %s3324_s17, 4  ;;  %s3084_s6 = int_to_ptr.vmem [resolvable:$false] %s3083_s6 }
  0x37   : > { %s3085_s15 = scalar_lea.vmem %s3084_s6, 512  ;;  %p3086_p4 = scmp.lt.s32.totalorder %s645_s10, %s3084_s6 }
  0x38   : > { %p3081_p2 = pnand %p3079_p1, %p3493_p7  ;;  %p3087_p5 = scmp.lt.s32.totalorder %s3085_s15, %s3078_s22 }
  0x39   : > { %s643_s30 = scalar_lea.hbm %s3959_s8, %s2637_s23 }
  0x3a   : > { %p3082_p3 = pneg %p3081_p2  ;;  %p3088_p8 = por %p3087_p5, %p3086_p4 }
  0x3c   : > { %p3089_p9 = pnand %p3088_p8, %p3082_p3 }
  0x3e   : > { %3092 = shalt.err (!%p3089_p9)
}
  0x3f   : > { %s3937_s5 = smov 64   ;;  %s3938_s11 = smov 4  }
  0x40   : > { %2850 = dma.hbm_to_vmem [thread:$0]  (!%p3476_p6), %s643_s30, 256, %s645_s10, %s3507_s12, %s3937_s5, %s3937_s5, %s3938_s11  }
  0x41   : > { %s3518_s6 = sadd.s32 4294967295, %s3321_s29   ;;  %p150_p10 = scmp.ne.s32.totalorder %s3305_s25, %s3301_s24 }
  0x42   : > { %p151_p11 = scmp.eq.s32.totalorder %s3518_s6, 0  ;;  %p2553_p12 = scmp.ge.s32.totalorder %s3321_s29, 1 }
  0x43   : > { %p505_p13 = scmp.lt.s32.totalorder %s3321_s29, 3  ;;  %s3327_s10 = smov [#allocation13]  }
  0x44   : > { %p3527_p0 = por %p151_p11, %p150_p10  ;;  %s541_s21 = sshll.u32 %s3327_s10, 4  ;;  %s542_s21 = int_to_ptr.vmem [resolvable:$true] %s541_s21 }
  0x45   : > { %p3531_p1 = pnand %p2553_p12, %p505_p13  ;;  %s3962_s3 = sld [smem:[#allocation30_spill]] }
  0x46   : > { %s569_s22 = scalar_lea.vmem [#allocation4], %s3471_s19  ;;  %s3104_s11 = scalar_lea.vmem %s542_s21, 256 }
  0x47   : > { %p2834_p2 = pneg %p3531_p1  ;;  %s576_s17 = sshll.u32 %s569_s22, 4  ;;  %s577_s17 = int_to_ptr.vmem [resolvable:$true] %s576_s17 }
  0x48   : > { %p3105_p5 = scmp.ne.s32.totalorder %s542_s21, %s3104_s11  ;;  %p3112_p10 = scmp.lt.s32.totalorder %s542_s21, %s542_s21 }
  0x49   : > { %p3543_p3 = pnand %p2834_p2, %p151_p11  ;;  %p3113_p12 = scmp.lt.s32.totalorder %s3104_s11, %s3104_s11 }
  0x4b   : > { %p3095_p4 = pneg %p3543_p3  ;;  %p3114_p13 = por %p3113_p12, %p3112_p10 }
  0x4d   : > { %p3107_p8 = pnand %p3105_p5, %p3095_p4 }
  0x4f   : > { %p3108_p9 = pneg %p3107_p8 }
  0x51   : > { %p3115_p2 = pnand %p3114_p13, %p3108_p9 }
  0x53   : > { %3118 = shalt.err (!%p3115_p2)
}
  0x54   : > { %s3964_s0 = smov 4   ;;  %s3965_s24 = smov 64  }
  0x55   : > { %2837 = dma.hbm_to_vmem [thread:$0]  (!%p3543_p3), %s3928_s14, 256, %s542_s21, [#allocation14], %s3965_s24, %s3965_s24, %s3964_s0  }
  0x56   : > { %s567_s5 = scalar_lea.sflag [#allocation5], %s3471_s19  ;;  %s3132_s15 = scalar_lea.vmem %s577_s17, 16 }
  0x57   : > { %p3133_p4 = scmp.ne.s32.totalorder %s577_s17, %s3132_s15  ;;  %s3328_s11 = smov [#allocation4]  }
  0x58   : > { %s3137_s10 = sshll.u32 %s3328_s11, 4  ;;  %s3138_s10 = int_to_ptr.vmem [resolvable:$false] %s3137_s10 }
  0x59   : > { %p3135_p5 = pnand %p3133_p4, %p3493_p7  ;;  %s3139_s8 = scalar_lea.vmem %s3138_s10, 32 }
  0x5a   : > { %p3140_p9 = scmp.lt.s32.totalorder %s577_s17, %s3138_s10  ;;  %p3141_p10 = scmp.lt.s32.totalorder %s3139_s8, %s3132_s15 }
  0x5b   : > { %p3136_p8 = pneg %p3135_p5 }
  0x5c   : > { %p3142_p12 = por %p3141_p10, %p3140_p9 }
  0x5e   : > { %p3143_p13 = pnand %p3142_p12, %p3136_p8 }
  0x60   : > { %3146 = shalt.err (!%p3143_p13)
}
  0x61   : > { %s3966_s21 = scalar_lea.hbm %s3962_s3, %s3474_s1  ;;  %s619_s0 = scalar_lea.vmem [#allocation9], %s3471_s19 }
  0x62   : > { %2841 = dma.hbm_to_vmem [thread:$0]  (!%p3476_p6), %s3966_s21, 16, %s577_s17, %s567_s5  }
  0x63   : > { %s626_s24 = sshll.u32 %s619_s0, 4  ;;  %s662_s8 = scalar_lea.hbm %s3923_s9, %s3474_s1  ;;  %s627_s24 = int_to_ptr.vmem [resolvable:$true] %s626_s24 }
  0x64   : > { %s3160_s15 = scalar_lea.vmem %s627_s24, 16  ;;  %s3329_s11 = smov [#allocation9]  }
  0x65   : > { %p3161_p3 = scmp.ne.s32.totalorder %s627_s24, %s3160_s15  ;;  %s3165_s23 = sshll.u32 %s3329_s11, 4  ;;  %s3166_s23 = int_to_ptr.vmem [resolvable:$false] %s3165_s23 }
  0x66   : > { %s3167_s30 = scalar_lea.vmem %s3166_s23, 32  ;;  %p3168_p5 = scmp.lt.s32.totalorder %s627_s24, %s3166_s23 }
  0x67   : > { %p3163_p2 = pnand %p3161_p3, %p3493_p7  ;;  %p3169_p8 = scmp.lt.s32.totalorder %s3167_s30, %s3160_s15 }
  0x69   : > { %p3164_p4 = pneg %p3163_p2  ;;  %p3170_p9 = por %p3169_p8, %p3168_p5 }
  0x6b   : > { %p3171_p10 = pnand %p3170_p9, %p3164_p4 }
  0x6d   : > { %3174 = shalt.err (!%p3171_p10)
}
  0x6e   : > { %s3967_s21 = scalar_lea.hbm %s3921_s7, %s3474_s1  ;;  %s657_s0 = scalar_lea.vmem [#allocation12], %s3471_s19 }
  0x6f   : > { %2847 = dma.hbm_to_vmem [thread:$0]  (!%p3476_p6), %s3967_s21, 16, %s627_s24, %s3489_s13  }
  0x70   : > { %s664_s22 = sshll.u32 %s657_s0, 4  ;;  %s3330_s15 = smov [#allocation12]   ;;  %s665_s22 = int_to_ptr.vmem [resolvable:$true] %s664_s22 }
  0x71   : > { %s3188_s10 = scalar_lea.vmem %s665_s22, 16  ;;  %s3193_s11 = sshll.u32 %s3330_s15, 4  ;;  %s3194_s11 = int_to_ptr.vmem [resolvable:$false] %s3193_s11 }
  0x72   : > { %p3189_p12 = scmp.ne.s32.totalorder %s665_s22, %s3188_s10  ;;  %s3195_s23 = scalar_lea.vmem %s3194_s11, 32 }
  0x73   : > { %p3196_p2 = scmp.lt.s32.totalorder %s665_s22, %s3194_s11  ;;  %p3197_p4 = scmp.lt.s32.totalorder %s3195_s23, %s3188_s10 }
  0x74   : > { %p3191_p13 = pnand %p3189_p12, %p3493_p7 }
  0x75   : > { %p3198_p5 = por %p3197_p4, %p3196_p2 }
  0x76   : > { %p3192_p3 = pneg %p3191_p13 }
  0x78   : > { %p3199_p8 = pnand %p3198_p5, %p3192_p3 }
  0x7a   : > { %3202 = shalt.err (!%p3199_p8)
}
  0x7b   : > { %2853 = dma.hbm_to_vmem [thread:$0]  (!%p3476_p6), %s662_s8, 16, %s665_s22, %s3507_s12  }
  0x7c   : > { %687 = sbr.rel (%p3531_p1) target bundleno = 3206 (0xc86), region = 84  ;;  %s3601_s18 = sand.u32 (!%p3531_p1), 1, %s3305_s25  }
  0x7d   : > { %s690_s24 = scalar_lea.sflag (!%p3531_p1), [#allocation5], %s3601_s18 }
  0x81   : > { %3276 = dma.done.wait (%p3527_p0), %s690_s24, 16  }
  0x82   : > { %3278 = vsyncadd (%p3527_p0), %s690_s24, 4294967280  ;;  %s697_s1 = sand.u32 1, %s3518_s6  }
  0x83   : > { %s698_s20 = scalar_lea.sflag [#allocation8], %s697_s1 }
  0x84   : > { %3280 = dma.done.wait (%p3527_p0), %s698_s20, 32  }
  0x85   : > { %3282 = vsyncadd (%p3527_p0), %s698_s20, 4294967264  ;;  %s2566_s26 = sshll.u32 %s3601_s18, 4  ;;  %s714_s17 = scalar_lea.sflag [#allocation11], %s697_s1 }
  0x86   : > { %s3617_s5 = scalar_lea.vmem [#allocation10], %s2566_s26 }
  0x87   : > { %3284 = dma.done.wait (%p3527_p0), %s714_s17, 272  }
  0x88   : > { %3286 = vsyncadd (%p3527_p0), %s714_s17, 4294967024 }
  0x89   : > { %3288 = dma.done.wait (%p151_p11), [#allocation14], 256  }
  0x8a   : > { %3290 = vsyncadd (%p151_p11), [#allocation14], 4294967040  ;;  %p836_p6 = scmp.lt.s32.totalorder %s3313_s27, 1  ;;  %s3968_s2 = sld [smem:[#allocation29_spill]] }
  0x8b   : > { %s3969_s20 = sld [smem:[#allocation32_spill]]  ;;  %p2576_p7 = scmp.ne.s32.totalorder %s3313_s27, 0 }
  0x8c   : > { %s3630_s0 = scalar_select %p836_p6, %s3313_s27, 1 }
  0x8d   : > { %s3970_s8 = sld [smem:[#allocation34_spill]] }
  0x8e   : > { %s2638_s22 = sshll.u32 %s3630_s0, 4  ;;  %s2641_s10 = sshll.u32 %s3630_s0, 6 }
  0x8f   : > { %s3642_s19 = scalar_lea.vmem %s3918_s4, %s2638_s22  ;;  %s3971_s16 = sld [smem:[#allocation35_spill]] }
  0x90   : > { %s3637_s11 = scalar_lea.vmem %s3968_s2, %s2638_s22  ;;  %s3972_s2 = sld [smem:[#allocation28_spill]] (!%p2576_p7) }
  0x91   : > { %s3647_s26 = scalar_lea.vmem %s3969_s20, %s2638_s22  ;;  %865 = sbr.rel (%p2576_p7) target bundleno = 466 (0x1d2), region = 112 }
  0x92   : > { %s3973_s1 = sld [smem:[#allocation27_spill]] (!%p2576_p7) }
  0x93   : > { %s3652_s30 = scalar_lea.vmem %s3970_s8, %s2641_s10 }
  0x95   : > { %s858_s15 = scalar_lea.vmem %s3971_s16, %s3630_s0 }
  0x96   : > { %vm870_vm0 = vcmask 261120   ;;  %v875_v0 = vld [vmem:[%s3972_s2] sm:$0xff]  ;;  %v877_v6 = vld [vmem:[%s3972_s2 + $0x10] sm:$0xff]  ;;  %v876_v8 = vld [vmem:[%s3972_s2 + $0x8] sm:$0xff]  ;;  %vm948_vm1 = vcmask 257024  }
  0x97   : > { %v879_v3 = vsel %vm870_vm0, %v875_v0, 0.0  ;;  %v885_v7 = vsel %vm870_vm0, %v877_v6, 0.0  ;;  %v878_v9 = vld [vmem:[%s3972_s2 + $0x18] sm:$0xff]  ;;  %v882_v10 = vsel %vm870_vm0, %v876_v8, 0.0 }
  0x98   : > { %v866_v1 = vld [vmem:[%s3973_s1] sm:$0xff]  ;;  %v867_v2 = vld [vmem:[%s3973_s1 + $0x8] sm:$0xff]  ;;  %v868_v4 = vld [vmem:[%s3973_s1 + $0x10] sm:$0xff]  ;;  %880 = vadd.xlane.f32.xlu0 %v879_v3  ;;  %886 = vadd.xlane.f32.xlu1 %v885_v7  ;;  %v888_v11 = vsel %vm870_vm0, %v878_v9, 0.0 }
  0x99   : > { %v869_v5 = vld [vmem:[%s3973_s1 + $0x18] sm:$0xff]  ;;  %871 = vst.msk [vmem:[#allocation2] sm:$0xff] %vm870_vm0, %v866_v1  ;;  %872 = vst.msk [vmem:[#allocation2 + $0x8] sm:$0xff] %vm870_vm0, %v867_v2 }
  0x9a   : > { %873 = vst.msk [vmem:[#allocation2 + $0x10] sm:$0xff] %vm870_vm0, %v868_v4  ;;  %874 = vst.msk [vmem:[#allocation2 + $0x18] sm:$0xff] %vm870_vm0, %v869_v5 }
  0x9c   : > { %883 = vadd.xlane.f32.xlu0 %v882_v10  ;;  %889 = vadd.xlane.f32.xlu1 %v888_v11 }
 0x121   : > { %v881_v12 = vpop.xlane.xlu0 %880  ;;  %v887_v14 = vpop.xlane.xlu1 %886 }
 0x122   : > { %v892_v13 = vmul.f32 0.03125, %v881_v12  ;;  %v894_v15 = vmul.f32 0.03125, %v887_v14 }
 0x124   : > { %v896_v16 = vsub.f32 %v875_v0, %v892_v13  ;;  %v898_v17 = vsub.f32 %v877_v6, %v894_v15 }
 0x125   : > { %v884_v18 = vpop.xlane.xlu0 %883  ;;  %v890_v20 = vpop.xlane.xlu1 %889 }
 0x126   : > { %v893_v19 = vmul.f32 0.03125, %v884_v18  ;;  %v900_v21 = vmul.f32 %v896_v16, %v896_v16  ;;  %v895_v22 = vmul.f32 0.03125, %v890_v20  ;;  %v902_v23 = vmul.f32 %v898_v17, %v898_v17 }
 0x128   : > { %v897_v24 = vsub.f32 %v876_v8, %v893_v19  ;;  %v904_v25 = vsel %vm870_vm0, %v900_v21, 0.0  ;;  %v899_v26 = vsub.f32 %v878_v9, %v895_v22  ;;  %v910_v27 = vsel %vm870_vm0, %v902_v23, 0.0 }
 0x129   : > { %905 = vadd.xlane.f32.xlu0 %v904_v25 }
 0x12a   : > { %v901_v28 = vmul.f32 %v897_v24, %v897_v24  ;;  %v903_v29 = vmul.f32 %v899_v26, %v899_v26 }
 0x12c   : > { %v907_v30 = vsel %vm870_vm0, %v901_v28, 0.0  ;;  %v913_v31 = vsel %vm870_vm0, %v903_v29, 0.0 }
 0x12d   : > { %911 = vadd.xlane.f32.xlu0 %v910_v27  ;;  %908 = vadd.xlane.f32.xlu1 %v907_v30 }
 0x131   : > { %914 = vadd.xlane.f32.xlu1 %v913_v31 }
 0x1b2   : > { %v906_v32 = vpop.xlane.xlu0 %905 }
 0x1b3   : > { %v916_v33 = vmul.f32 0.03125, %v906_v32 }
 0x1b5   : > { %v920_v34 = vadd.f32 1e-05, %v916_v33 }
 0x1b6   : > { %v909_v35 = vpop.xlane.xlu1 %908  ;;  %v912_v36 = vpop.xlane.xlu0 %911 }
 0x1b7   : > { %2921 = vrsqrt.f32 %v920_v34  ;;  %v917_v37 = vmul.f32 0.03125, %v909_v35  ;;  %v918_v38 = vmul.f32 0.03125, %v912_v36 }
 0x1b9   : > { %v921_v39 = vadd.f32 1e-05, %v917_v37  ;;  %v922_v40 = vadd.f32 1e-05, %v918_v38 }
 0x1ba   : > { %v915_v41 = vpop.xlane.xlu1 %914 }
 0x1bb   : > { %2923 = vrsqrt.f32 %v921_v39  ;;  %v919_v42 = vmul.f32 0.03125, %v915_v41 }
 0x1bc   : > { %2925 = vrsqrt.f32 %v922_v40 }
 0x1bd   : > { %v923_v43 = vadd.f32 1e-05, %v919_v42 }
 0x1bf   : > { %2927 = vrsqrt.f32 %v923_v43 }
 0x1c4   : > { %v2922_v44 = vpop.eup %2921 }
 0x1c5   : > { %v928_v45 = vmul.f32 %v2922_v44, %v896_v16 }
 0x1c7   : > { %v2642_v46 = vpack.c.bf16 %v928_v45, %v928_v45 }
 0x1c8   : > { %v2924_v47 = vpop.eup %2923 }
 0x1c9   : > { %v2926_v48 = vpop.eup %2925  ;;  %949 = vst.msk [vmem:[#allocation3] sm:$0xf] %vm948_vm1, %v2642_v46  ;;  %v929_v49 = vmul.f32 %v2924_v47, %v897_v24 }
 0x1ca   : > { %v930_v50 = vmul.f32 %v2926_v48, %v898_v17 }
 0x1cb   : > { %v2643_v51 = vpack.c.bf16 %v929_v49, %v929_v49 }
 0x1cc   : > { %v2928_v52 = vpop.eup %2927  ;;  %v2644_v53 = vpack.c.bf16 %v930_v50, %v930_v50 }
 0x1cd   : > { %950 = vst.msk [vmem:[#allocation3 + $0x4] sm:$0xf] %vm948_vm1, %v2643_v51  ;;  %v931_v54 = vmul.f32 %v2928_v52, %v899_v26 }
 0x1ce   : > { %951 = vst.msk [vmem:[#allocation3 + $0x8] sm:$0xf] %vm948_vm1, %v2644_v53 }
 0x1cf   : > { %v2645_v55 = vpack.c.bf16 %v931_v54, %v931_v54 }
 0x1d1   : > { %952 = vst.msk [vmem:[#allocation3 + $0xc] sm:$0xf] %vm948_vm1, %v2645_v55 }
 0x1d2 PF: > { %v3695_v56 = vld [vmem:[#allocation2] sm:$0xff]  ;;  %vm961_vm2 = vcmask 261120   ;;  %v3697_v57 = vld [vmem:[#allocation2 + $0x10] sm:$0xff]  ;;  %v3699_v58 = vld [vmem:[#allocation2 + $0x8] sm:$0xff]  ;;  %v3331_v48 = vmov 0.0   ;;  %vm3332_vm3 = vmmov 0  }
 0x1d3   : > { %v962_v59 = vsel %vm961_vm2, %v3695_v56, 0.0  ;;  %v968_v60 = vsel %vm961_vm2, %v3697_v57, 0.0  ;;  %v3705_v61 = vld [vmem:[#allocation2 + $0x18] sm:$0xff]  ;;  %v965_v62 = vsel %vm961_vm2, %v3699_v58, 0.0  ;;  %v2959_v20 = vld [vmem:[%s3637_s11 + $0x8] sm:$0xff]   ;;  %v2960_v21 = vld [vmem:[%s3637_s11] sm:$0xff]   ;;  %2724 = vmatprep.subr.bf16.mxu0 %v3331_v48  ;;  %2726 = vmatprep.mubr.msk.bf16.mxu0 %vm3332_vm3, %v3331_v48 }
 0x1d4   : > { %963 = vadd.xlane.f32.xlu0 %v962_v59  ;;  %969 = vadd.xlane.f32.xlu1 %v968_v60  ;;  %v971_v63 = vsel %vm961_vm2, %v3705_v61, 0.0  ;;  %v2961_v22 = vld [vmem:[%s3642_s19 + $0x8] sm:$0xff]   ;;  %v2963_v44 = vld [vmem:[#allocation3] sm:$0xff]   ;;  %s3974_s11 = scalar_lea.vmem [#allocation7], %s3601_s18  ;;  %s3333_s20 = smov 112   ;;  %vm1223_vm4 = vcmask 130048  }
 0x1d5   : > { %2696 = vmatprep.subr.bf16.mxu1 %v2959_v20  ;;  %v2962_v46 = vld [vmem:[%s3642_s19] sm:$0xff]   ;;  %s3975_s19 = scalar_lea.vmem [#allocation4], %s3601_s18  ;;  %s3334_s21 = smov 96  }
 0x1d6   : > { %2697 = vmatpush3.bf16.msra.mxu1 %v2959_v20  ;;  %v2586_v54 = vld [vmem:[%s3974_s11] ss:$0 sm:$0xff]  ;;  %s3335_s3 = smov 16   ;;  %p2620_p11 = scmp.ne.s32.totalorder %s3313_s27, 1 }
 0x1d7   : > { %2698 = vmatprep.subr.bf16.mxu1 %v2960_v21  ;;  %s3979_s8 = sld [smem:[#allocation36_spill]] (!%p2620_p11) }
 0x1d8   : > { %966 = vadd.xlane.f32.xlu0 %v965_v62  ;;  %972 = vadd.xlane.f32.xlu1 %v971_v63  ;;  %v2964_v47 = vld [vmem:[#allocation3 + $0x8] sm:$0xff]   ;;  %v2581_v63 = vld [vmem:[%s3975_s19] ss:$0 sm:$0xff]  ;;  %s3980_s23 = sld [smem:[#allocation37_spill]] (!%p2620_p11) }
 0x1d9   : > { %s3981_s22 = sld [smem:[#allocation38_spill]] (!%p2620_p11) }
 0x1da   : > { %2699 = vmatpush3.bf16.msra.mxu1 %v2960_v21 }
 0x1db   : > { %2704 = vmatprep.subr.bf16.mxu1 %v2961_v22 }
 0x25d   : > { %v964_v0 = vpop.xlane.xlu0 %963  ;;  %v970_v1 = vpop.xlane.xlu1 %969 }
 0x25e   : > { %v975_v2 = vmul.f32 0.03125, %v964_v0  ;;  %v977_v3 = vmul.f32 0.03125, %v970_v1 }
 0x260   : > { %v979_v4 = vsub.f32 %v3695_v56, %v975_v2  ;;  %v981_v5 = vsub.f32 %v3697_v57, %v977_v3 }
 0x261   : > { %v967_v6 = vpop.xlane.xlu0 %966  ;;  %v973_v7 = vpop.xlane.xlu1 %972 }
 0x262   : > { %v976_v8 = vmul.f32 0.03125, %v967_v6  ;;  %v978_v9 = vmul.f32 0.03125, %v973_v7  ;;  %v983_v10 = vmul.f32 %v979_v4, %v979_v4  ;;  %v985_v11 = vmul.f32 %v981_v5, %v981_v5 }
 0x264   : > { %v980_v12 = vsub.f32 %v3699_v58, %v976_v8  ;;  %v982_v13 = vsub.f32 %v3705_v61, %v978_v9  ;;  %v987_v14 = vsel %vm961_vm2, %v983_v10, 0.0  ;;  %v993_v15 = vsel %vm961_vm2, %v985_v11, 0.0 }
 0x265   : > { %988 = vadd.xlane.f32.xlu0 %v987_v14 }
 0x266   : > { %v984_v16 = vmul.f32 %v980_v12, %v980_v12  ;;  %v986_v17 = vmul.f32 %v982_v13, %v982_v13 }
 0x268   : > { %v990_v18 = vsel %vm961_vm2, %v984_v16, 0.0  ;;  %v996_v19 = vsel %vm961_vm2, %v986_v17, 0.0 }
 0x269   : > { %994 = vadd.xlane.f32.xlu0 %v993_v15  ;;  %991 = vadd.xlane.f32.xlu1 %v990_v18 }
 0x26d   : > { %997 = vadd.xlane.f32.xlu1 %v996_v19 }
 0x2ee   : > { %v989_v23 = vpop.xlane.xlu0 %988 }
 0x2ef   : > { %v999_v24 = vmul.f32 0.03125, %v989_v23 }
 0x2f1   : > { %v1003_v25 = vadd.f32 1e-05, %v999_v24 }
 0x2f2   : > { %v992_v26 = vpop.xlane.xlu1 %991  ;;  %v995_v27 = vpop.xlane.xlu0 %994 }
 0x2f3   : > { %v1000_v28 = vmul.f32 0.03125, %v992_v26  ;;  %v1001_v29 = vmul.f32 0.03125, %v995_v27  ;;  %2977 = vrsqrt.f32 %v1003_v25 }
 0x2f5   : > { %v1004_v30 = vadd.f32 1e-05, %v1000_v28  ;;  %v1005_v31 = vadd.f32 1e-05, %v1001_v29 }
 0x2f6   : > { %v998_v32 = vpop.xlane.xlu1 %997 }
 0x2f7   : > { %2979 = vrsqrt.f32 %v1004_v30  ;;  %v1002_v33 = vmul.f32 0.03125, %v998_v32 }
 0x2f8   : > { %2981 = vrsqrt.f32 %v1005_v31 }
 0x2f9   : > { %v1006_v34 = vadd.f32 1e-05, %v1002_v33 }
 0x2fb   : > { %2983 = vrsqrt.f32 %v1006_v34 }
 0x300   : > { %v2978_v35 = vpop.eup %2977 }
 0x301   : > { %v1011_v37 = vmul.f32 %v2978_v35, %v979_v4 }
 0x304   : > { %v2980_v36 = vpop.eup %2979 }
 0x305   : > { %v1012_v38 = vmul.f32 %v2980_v36, %v980_v12  ;;  %v2982_v39 = vpop.eup %2981 }
 0x306   : > { %v1013_v42 = vmul.f32 %v2982_v39, %v981_v5 }
 0x307   : > { %v1015_v40 = vpack.c.bf16 %v1012_v38, %v1011_v37 }
 0x308   : > { %v2984_v41 = vpop.eup %2983 }
 0x309   : > { %2700 = vmatprep.mubr.msk.bf16.mxu1 %vm961_vm2, %v1015_v40  ;;  %v1014_v43 = vmul.f32 %v2984_v41, %v982_v13 }
 0x30b   : > { %v1016_v45 = vpack.c.bf16 %v1014_v43, %v1013_v42 }
 0x30d   : > { %2701 = vmatmul.mubr.msk.bf16.vlgmr.msra.gmra.mxu1 %vm961_vm2, %v1016_v45 }
 0x30e   : > { %2705 = vmatpush3.bf16.msra.mxu1 %v2961_v22  ;;  %2708 = vmatprep.mubr.msk.bf16.mxu1 %vm961_vm2, %v2963_v44 }
 0x30f   : > { %2706 = vmatprep.subr.bf16.mxu1 %v2962_v46 }
 0x312   : > { %2707 = vmatpush3.bf16.msra.mxu1 %v2962_v46 }
 0x313   : > { %2712 = vmatprep.subr.bf16.mxu1 %v3331_v48 }
 0x315   : > { %2709 = vmatmul.mubr.msk.bf16.vlgmr.msra.gmra.mxu1 %vm961_vm2, %v2964_v47 }
 0x316   : > { %2714 = vmatprep.mubr.msk.bf16.mxu1 %vm3332_vm3, %v3331_v48 }
 0x3cd   : > { %v2702_v49 = vpop.f32.mrf.mxu1 }
 0x3ce   : > { %v1089_v11 = vadd.f32 %v2702_v49, %v2581_v63 }
 0x3cf   : > { %v1080_v50 = vpop.f32.mrf.mxu1 }
 0x3d0   : > { %v1081_v5 = vadd.f32 %v2581_v63, %v1080_v50 }
 0x3d1   : > { %v2703_v51 = vpop.f32.mrf.mxu1 }
 0x3d2   : > { %v1092_v8 = vadd.f32 %v2703_v51, %v2581_v63 }
 0x3d3   : > { %v1083_v52 = vpop.f32.mrf.mxu1 }
 0x3d4   : > { %v1084_v1 = vadd.f32 %v2581_v63, %v1083_v52  ;;  %v2944_v12 = vpack.i.bf16 %v1092_v8, %v1089_v11  ;;  %v1200_v16 = vpack.c.bf16 %v1092_v8, %v1089_v11 }
 0x3d5   : > { %v2710_v53 = vpop.f32.mrf.mxu1 }
 0x3d6   : > { %v1177_v60 = vadd.f32 %v2710_v53, %v2586_v54  ;;  %v2939_v9 = vpack.i.bf16 %v1084_v1, %v1081_v5  ;;  %v1199_v14 = vpack.c.bf16 %v1084_v1, %v1081_v5 }
 0x3d7   : > { %v1168_v55 = vpop.f32.mrf.mxu1 }
 0x3d8   : > { %v1169_v2 = vadd.f32 %v2586_v54, %v1168_v55 }
 0x3d9   : > { %v2711_v59 = vpop.f32.mrf.mxu1 }
 0x3da   : > { %v1180_v62 = vadd.f32 %v2711_v59, %v2586_v54 }
 0x3db   : > { %v1171_v0 = vpop.f32.mrf.mxu1 }
 0x3dc   : > { %v2934_v3 = vpack.i.bf16 %v1180_v62, %v1177_v60  ;;  %v1172_v4 = vadd.f32 %v2586_v54, %v1171_v0  ;;  %v1220_v13 = vpack.c.bf16 %v1180_v62, %v1177_v60 }
 0x3de   : > { %v2929_v6 = vpack.i.bf16 %v1172_v4, %v1169_v2  ;;  %v3737_v7 = vpack.c.bf16 %v1172_v4, %v1169_v2  ;;  %2935 = vrot.lane.b32.xlu1 %v2934_v3, %s3333_s20  ;;  %v1275_v15 = vsel %vm1223_vm4, %v1220_v13, 0 }
 0x3e0   : > { %2930 = vrot.lane.b32.xlu0 %v2929_v6, %s3333_s20  ;;  %v1228_v10 = vsel %vm1223_vm4, %v3737_v7, 0 }
 0x3e1   : > { %2713 = vmatpush3.bf16.xpose.msra.mxu1 %v1228_v10 }
 0x3e2   : > { %2940 = vrot.lane.b32.xlu1 %v2939_v9, %s3333_s20  ;;  %2718 = vmatprep.subr.bf16.mxu1 %v3331_v48 }
 0x3e6   : > { %2945 = vrot.lane.b32.xlu1 %v2944_v12, %s3333_s20 }
 0x3e8   : > { %2715 = vmatmul.mubr.msk.bf16.vlgmr.msra.gmra.mxu1 %vm1223_vm4, %v1199_v14 }
 0x3e9   : > { %2719 = vmatpush3.bf16.xpose.msra.mxu1 %v1275_v15  ;;  %2720 = vmatprep.mubr.msk.bf16.mxu1 %vm3332_vm3, %v3331_v48 }
 0x3ea   : > { %2730 = vmatprep.subr.bf16.mxu1 %v3331_v48 }
 0x3f0   : > { %2721 = vmatmul.mubr.msk.bf16.vlgmr.msra.gmra.mxu1 %vm1223_vm4, %v1200_v16 }
 0x3f1   : > { %2732 = vmatprep.mubr.msk.bf16.mxu1 %vm3332_vm3, %v3331_v48 }
 0x450   : > { %v2936_v17 = vpop.permute.xlu1 %2935 }
 0x451   : > { %v2938_v18 = vunpack.i.h.bf16 %v2936_v17  ;;  %v2937_v19 = vunpack.i.l.bf16 %v2936_v17 }
 0x452   : > { %v2931_v20 = vpop.permute.xlu0 %2930 }
 0x453   : > { %v1222_v21 = vpack.c.bf16 %v2938_v18, %v2937_v19  ;;  %v2933_v22 = vunpack.i.h.bf16 %v2931_v20  ;;  %v2932_v23 = vunpack.i.l.bf16 %v2931_v20 }
 0x454   : > { %v2941_v24 = vpop.permute.xlu1 %2940 }
 0x455   : > { %v1369_v25 = vsel %vm1223_vm4, %v1222_v21, 0  ;;  %v1221_v26 = vpack.c.bf16 %v2933_v22, %v2932_v23  ;;  %v2943_v29 = vunpack.i.h.bf16 %v2941_v24  ;;  %v2942_v30 = vunpack.i.l.bf16 %v2941_v24 }
 0x456   : > { %2731 = vmatpush3.bf16.xpose.msra.mxu1 %v1369_v25 }
 0x457   : > { %v1322_v27 = vsel %vm1223_vm4, %v1221_v26, 0  ;;  %2742 = vmatprep.subr.bf16.mxu1 %v3331_v48  ;;  %v1201_v34 = vpack.c.bf16 %v2943_v29, %v2942_v30 }
 0x458   : > { %2725 = vmatpush3.bf16.xpose.msra.mxu0 %v1322_v27  ;;  %v2946_v28 = vpop.permute.xlu1 %2945 }
 0x459   : > { %v2948_v31 = vunpack.i.h.bf16 %v2946_v28  ;;  %v2947_v32 = vunpack.i.l.bf16 %v2946_v28  ;;  %2736 = vmatprep.subr.bf16.mxu0 %v3331_v48 }
 0x45b   : > { %v1202_v33 = vpack.c.bf16 %v2948_v31, %v2947_v32 }
 0x45d   : > { %2733 = vmatmul.mubr.msk.bf16.vlgmr.msra.gmra.mxu1 %vm1223_vm4, %v1202_v33 }
 0x45e   : > { %2744 = vmatprep.mubr.msk.bf16.mxu1 %vm3332_vm3, %v3331_v48 }
 0x45f   : > { %2727 = vmatmul.mubr.msk.bf16.vlgmr.msra.gmra.mxu0 %vm1223_vm4, %v1201_v34 }
 0x460   : > { %2738 = vmatprep.mubr.msk.bf16.mxu0 %vm3332_vm3, %v3331_v48 }
 0x4a8   : > { %v1264_v35 = vpop.f32.mrf.mxu1 }
 0x4a9   : > { %v1412_v36 = vsel %vm1223_vm4, %v1264_v35, -inf }
 0x4aa   : > { %1413 = vmax.xlane.f32.xlu0 %v1412_v36  ;;  %v2716_v37 = vpop.f32.mrf.mxu1 }
 0x4ac   : > { %v1267_v38 = vpop.f32.mrf.mxu1 }
 0x4ad   : > { %v1415_v39 = vsel %vm1223_vm4, %v1267_v38, -inf }
 0x4ae   : > { %1416 = vmax.xlane.f32.xlu1 %v1415_v39  ;;  %v2717_v40 = vpop.f32.mrf.mxu1 }
 0x4b0   : > { %v1311_v41 = vpop.f32.mrf.mxu1 }
 0x4b1   : > { %v1418_v42 = vsel %vm1223_vm4, %v1311_v41, -inf }
 0x4b2   : > { %1419 = vmax.xlane.f32.xlu0 %v1418_v42  ;;  %v2722_v43 = vpop.f32.mrf.mxu1 }
 0x4b4   : > { %v1314_v44 = vpop.f32.mrf.mxu1 }
 0x4b5   : > { %v1421_v45 = vsel %vm1223_vm4, %v1314_v44, -inf }
 0x4b6   : > { %1422 = vmax.xlane.f32.xlu0 %v1421_v45  ;;  %v2723_v46 = vpop.f32.mrf.mxu1 }
 0x4bf   : > { %1537 = vrot.lane.b32.xlu1 %v1220_v13, %s3334_s21 }
 0x4c3   : > { %1585 = vrot.lane.b32.xlu1 %v1221_v26, %s3334_s21 }
 0x51d   : > { %v1405_v47 = vpop.f32.mrf.mxu1 }
 0x51e   : > { %v1430_v49 = vsel %vm1223_vm4, %v1405_v47, -inf }
 0x51f   : > { %v1358_v50 = vpop.f32.mrf.mxu0  ;;  %1431 = vmax.xlane.f32.xlu0 %v1430_v49  ;;  %v2734_v51 = vpop.f32.mrf.mxu1 }
 0x520   : > { %v1424_v54 = vsel %vm1223_vm4, %v1358_v50, -inf }
 0x521   : > { %v2728_v52 = vpop.f32.mrf.mxu0  ;;  %v1408_v53 = vpop.f32.mrf.mxu1 }
 0x522   : > { %v1433_v55 = vsel %vm1223_vm4, %v1408_v53, -inf }
 0x523   : > { %v1361_v59 = vpop.f32.mrf.mxu0  ;;  %1425 = vmax.xlane.f32.xlu0 %v1424_v54  ;;  %1434 = vmax.xlane.f32.xlu1 %v1433_v55  ;;  %v2735_v60 = vpop.f32.mrf.mxu1 }
 0x524   : > { %v1427_v63 = vsel %vm1223_vm4, %v1361_v59, -inf }
 0x525   : > { %v2729_v62 = vpop.f32.mrf.mxu0 }
 0x527   : > { %1428 = vmax.xlane.f32.xlu1 %v1427_v63 }
 0x533   : > { %v1414_v0 = vpop.xlane.xlu0 %1413 }
 0x534   : > { %v1436_v1 = vsub.f32 %v1264_v35, %v1414_v0  ;;  %v2965_v0 = vld [vmem:[%s3647_s26 + $0x8] sm:$0xff]  }
 0x536   : > { %v1444_v2 = vmul.f32 1.442695, %v1436_v1 }
 0x537   : > { %v1417_v3 = vpop.xlane.xlu1 %1416 }
 0x538   : > { %v1437_v4 = vsub.f32 %v1267_v38, %v1417_v3  ;;  %1633 = vrot.lane.b32.xlu1 %v1222_v21, %s3334_s21  ;;  %2985 = vpow2.f32 %v1444_v2  ;;  %v2966_v2 = vld [vmem:[%s3647_s26] sm:$0xff]   ;;  %s3976_s26 = scalar_lea.vmem [#allocation9], %s3601_s18 }
 0x539   : > { %1489 = vrot.lane.b32.xlu0 %v3737_v7, %s3334_s21 }
 0x53a   : > { %v1446_v5 = vmul.f32 1.442695, %v1437_v4 }
 0x53b   : > { %v1538_v6 = vpop.permute.xlu1 %1537  ;;  %v1420_v8 = vpop.xlane.xlu0 %1419 }
 0x53c   : > { %2987 = vpow2.f32 %v1446_v5  ;;  %v1438_v9 = vsub.f32 %v1311_v41, %v1420_v8  ;;  %2743 = vmatpush3.bf16.msra.mxu1 %v1538_v6 }
 0x53d   : > { %2754 = vmatprep.subr.bf16.mxu1 %v3331_v48 }
 0x53e   : > { %v1448_v10 = vmul.f32 1.442695, %v1438_v9 }
 0x53f   : > { %v1423_v11 = vpop.xlane.xlu0 %1422  ;;  %v1586_v19 = vpop.permute.xlu1 %1585 }
 0x540   : > { %v1439_v12 = vsub.f32 %v1314_v44, %v1423_v11  ;;  %2989 = vpow2.f32 %v1448_v10 }
 0x542   : > { %v1450_v13 = vmul.f32 1.442695, %v1439_v12 }
 0x544   : > { %2991 = vpow2.f32 %v1450_v13 }
 0x545   : > { %v2986_v14 = vpop.eup %2985 }
 0x546   : > { %v1460_v44 = vsel %vm1223_vm4, %v2986_v14, 0.0 }
 0x549   : > { %v2988_v15 = vpop.eup %2987 }
 0x54a   : > { %v1484_v16 = vpack.c.bf16 %v2988_v15, %v2986_v14  ;;  %v1463_v43 = vsel %vm1223_vm4, %v2988_v15, 0.0 }
 0x54d   : > { %v2990_v17 = vpop.eup %2989 }
 0x54e   : > { %v1466_v46 = vsel %vm1223_vm4, %v2990_v17, 0.0 }
 0x551   : > { %v2992_v7 = vpop.eup %2991 }
 0x552   : > { %v1485_v18 = vpack.c.bf16 %v2992_v7, %v2990_v17  ;;  %v1469_v45 = vsel %vm1223_vm4, %v2992_v7, 0.0 }
 0x554   : > { %2745 = vmatmul.mubr.msk.bf16.vlgmr.msra.gmra.mxu1 %vm1223_vm4, %v1485_v18 }
 0x555   : > { %2756 = vmatprep.mubr.msk.bf16.mxu1 %vm3332_vm3, %v3331_v48 }
 0x5a8   : > { %v1432_v20 = vpop.xlane.xlu0 %1431 }
 0x5a9   : > { %v1442_v21 = vsub.f32 %v1405_v47, %v1432_v20 }
 0x5ab   : > { %v1456_v22 = vmul.f32 1.442695, %v1442_v21 }
 0x5ac   : > { %v1426_v23 = vpop.xlane.xlu0 %1425  ;;  %v1435_v24 = vpop.xlane.xlu1 %1434 }
 0x5ad   : > { %v1440_v25 = vsub.f32 %v1358_v50, %v1426_v23  ;;  %v1443_v26 = vsub.f32 %v1408_v53, %v1435_v24  ;;  %2993 = vpow2.f32 %v1456_v22 }
 0x5af   : > { %v1452_v27 = vmul.f32 1.442695, %v1440_v25  ;;  %v1458_v28 = vmul.f32 1.442695, %v1443_v26 }
 0x5b0   : > { %v1490_v29 = vpop.permute.xlu0 %1489  ;;  %v1429_v30 = vpop.xlane.xlu1 %1428 }
 0x5b1   : > { %2995 = vpow2.f32 %v1452_v27  ;;  %v1441_v31 = vsub.f32 %v1361_v59, %v1429_v30  ;;  %2737 = vmatpush3.bf16.msra.mxu0 %v1490_v29 }
 0x5b2   : > { %2997 = vpow2.f32 %v1458_v28  ;;  %2748 = vmatprep.subr.bf16.mxu0 %v3331_v48 }
 0x5b3   : > { %v1454_v32 = vmul.f32 1.442695, %v1441_v31 }
 0x5b4   : > { %2739 = vmatmul.mubr.msk.bf16.vlgmr.msra.gmra.mxu0 %vm1223_vm4, %v1484_v16  ;;  %v1634_v33 = vpop.permute.xlu1 %1633 }
 0x5b5   : > { %2999 = vpow2.f32 %v1454_v32  ;;  %2749 = vmatpush3.bf16.msra.mxu0 %v1586_v19  ;;  %2755 = vmatpush3.bf16.msra.mxu1 %v1634_v33 }
 0x5b6   : > { %2750 = vmatprep.mubr.msk.bf16.mxu0 %vm3332_vm3, %v3331_v48  ;;  %2760 = vmatprep.subr.bf16.mxu0 %v2965_v0 }
 0x5ba   : > { %v2994_v34 = vpop.eup %2993 }
 0x5bb   : > { %v1478_v40 = vsel %vm1223_vm4, %v2994_v34, 0.0 }
 0x5be   : > { %v2996_v35 = vpop.eup %2995 }
 0x5bf   : > { %v2998_v36 = vpop.eup %2997  ;;  %v1472_v37 = vsel %vm1223_vm4, %v2996_v35, 0.0 }
 0x5c0   : > { %1473 = vadd.xlane.f32.xlu0 %v1472_v37  ;;  %v1487_v38 = vpack.c.bf16 %v2998_v36, %v2994_v34  ;;  %v1481_v48 = vsel %vm1223_vm4, %v2998_v36, 0.0 }
 0x5c2   : > { %v3000_v39 = vpop.eup %2999  ;;  %2757 = vmatmul.mubr.msk.bf16.vlgmr.msra.gmra.mxu1 %vm1223_vm4, %v1487_v38 }
 0x5c3   : > { %v1475_v41 = vsel %vm1223_vm4, %v3000_v39, 0.0  ;;  %v1486_v42 = vpack.c.bf16 %v3000_v39, %v2996_v35 }
 0x5c4   : > { %1479 = vadd.xlane.f32.xlu0 %v1478_v40  ;;  %1476 = vadd.xlane.f32.xlu1 %v1475_v41 }
 0x5c5   : > { %2751 = vmatmul.mubr.msk.bf16.vlgmr.msra.gmra.mxu0 %vm1223_vm4, %v1486_v42 }
 0x5c6   : > { %2761 = vmatpush3.bf16.msra.mxu0 %v2965_v0 }
 0x5c7   : > { %2762 = vmatprep.subr.bf16.mxu0 %v2966_v2 }
 0x5c8   : > { %1482 = vadd.xlane.f32.xlu0 %v1481_v48  ;;  %1464 = vadd.xlane.f32.xlu1 %v1463_v43 }
 0x5ca   : > { %2763 = vmatpush3.bf16.msra.mxu0 %v2966_v2 }
 0x5cc   : > { %1461 = vadd.xlane.f32.xlu0 %v1460_v44  ;;  %1470 = vadd.xlane.f32.xlu1 %v1469_v45  ;;  %v2601_v44 = vld [vmem:[%s3976_s26] ss:$0 sm:$0xff] }
 0x5d0   : > { %1467 = vadd.xlane.f32.xlu0 %v1466_v46 }
 0x614   : > { %v1577_v47 = vpop.f32.mrf.mxu1 }
 0x616   : > { %v2746_v49 = vpop.f32.mrf.mxu1 }
 0x618   : > { %v1580_v50 = vpop.f32.mrf.mxu1 }
 0x61a   : > { %v2747_v51 = vpop.f32.mrf.mxu1 }
 0x649   : > { %v1474_v52 = vpop.xlane.xlu0 %1473 }
 0x64d   : > { %v1480_v53 = vpop.xlane.xlu0 %1479  ;;  %v1477_v62 = vpop.xlane.xlu1 %1476 }
 0x64e   : > { %3001 = vrcp.f32 %v1480_v53 }
 0x651   : > { %v1483_v55 = vpop.xlane.xlu0 %1482  ;;  %v1465_v20 = vpop.xlane.xlu1 %1464 }
 0x652   : > { %3003 = vrcp.f32 %v1483_v55 }
 0x653   : > { %3005 = vrcp.f32 %v1474_v52 }
 0x654   : > { %3007 = vrcp.f32 %v1477_v62 }
 0x655   : > { %v1462_v21 = vpop.xlane.xlu0 %1461  ;;  %v1471_v22 = vpop.xlane.xlu1 %1470 }
 0x656   : > { %3009 = vrcp.f32 %v1471_v22 }
 0x659   : > { %v1468_v23 = vpop.xlane.xlu0 %1467 }
 0x65a   : > { %3011 = vrcp.f32 %v1468_v23 }
 0x65b   : > { %v3002_v4 = vpop.eup %3001  ;;  %3013 = vrcp.f32 %v1465_v20 }
 0x65c   : > { %3015 = vrcp.f32 %v1462_v21 }
 0x65f   : > { %v3004_v6 = vpop.eup %3003 }
 0x660   : > { %v3006_v12 = vpop.eup %3005 }
 0x661   : > { %v3008_v14 = vpop.eup %3007 }
 0x663   : > { %v3010_v24 = vpop.eup %3009 }
 0x664   : > { %v1691_v32 = vmul.f32 %v3010_v24, %v1580_v50 }
 0x667   : > { %v3012_v25 = vpop.eup %3011 }
 0x668   : > { %v3014_v29 = vpop.eup %3013  ;;  %v1690_v31 = vmul.f32 %v3012_v25, %v1577_v47 }
 0x669   : > { %v3016_v30 = vpop.eup %3015 }
 0x674   : > { %v1529_v54 = vpop.f32.mrf.mxu0 }
 0x675   : > { %v1688_v34 = vmul.f32 %v3016_v30, %v1529_v54 }
 0x676   : > { %v2740_v59 = vpop.f32.mrf.mxu0 }
 0x678   : > { %v1532_v60 = vpop.f32.mrf.mxu0 }
 0x679   : > { %v1689_v35 = vmul.f32 %v3014_v29, %v1532_v60 }
 0x67a   : > { %v2741_v63 = vpop.f32.mrf.mxu0 }
 0x682   : > { %v1673_v1 = vpop.f32.mrf.mxu1 }
 0x683   : > { %v1694_v9 = vmul.f32 %v3002_v4, %v1673_v1 }
 0x684   : > { %v2758_v3 = vpop.f32.mrf.mxu1 }
 0x685   : > { %v1625_v5 = vpop.f32.mrf.mxu0 }
 0x686   : > { %v1676_v8 = vpop.f32.mrf.mxu1  ;;  %v1692_v17 = vmul.f32 %v3006_v12, %v1625_v5 }
 0x687   : > { %v1695_v10 = vmul.f32 %v3004_v6, %v1676_v8  ;;  %v2752_v11 = vpop.f32.mrf.mxu0 }
 0x688   : > { %v2759_v13 = vpop.f32.mrf.mxu1 }
 0x689   : > { %v2954_v15 = vpack.i.bf16 %v1695_v10, %v1694_v9  ;;  %v1628_v16 = vpop.f32.mrf.mxu0 }
 0x68a   : > { %v1693_v7 = vmul.f32 %v3008_v14, %v1628_v16 }
 0x68b   : > { %2955 = vrot.lane.b32.xlu1 %v2954_v15, %s3335_s3  ;;  %v2753_v18 = vpop.f32.mrf.mxu0 }
 0x68c   : > { %v2949_v19 = vpack.i.bf16 %v1693_v7, %v1692_v17  ;;  %v2967_v7 = vld [vmem:[%s3617_s5 + $0x8] sm:$0xff]   ;;  %v2968_v18 = vld [vmem:[%s3617_s5] sm:$0xff]   ;;  %s3977_s5 = scalar_lea.vmem [#allocation12], %s3601_s18 }
 0x68d   : > { %2768 = vmatprep.subr.bf16.mxu1 %v2967_v7 }
 0x68e   : > { %2950 = vrot.lane.b32.xlu0 %v2949_v19, %s3335_s3  ;;  %2769 = vmatpush3.bf16.msra.mxu1 %v2967_v7 }
 0x68f   : > { %2770 = vmatprep.subr.bf16.mxu1 %v2968_v18 }
 0x692   : > { %2771 = vmatpush3.bf16.msra.mxu1 %v2968_v18 }
 0x6fd   : > { %v2956_v26 = vpop.permute.xlu1 %2955 }
 0x6fe   : > { %v2958_v27 = vunpack.i.h.bf16 %v2956_v26  ;;  %v2957_v28 = vunpack.i.l.bf16 %v2956_v26 }
 0x700   : > { %v2951_v33 = vpop.permute.xlu0 %2950  ;;  %v1715_v38 = vsel %vm1223_vm4, %v1691_v32, %v2958_v27  ;;  %v1714_v39 = vsel %vm1223_vm4, %v1690_v31, %v2957_v28 }
 0x701   : > { %v2953_v36 = vunpack.i.h.bf16 %v2951_v33  ;;  %v2952_v37 = vunpack.i.l.bf16 %v2951_v33  ;;  %v1717_v48 = vpack.c.bf16 %v1715_v38, %v1714_v39 }
 0x703   : > { %v1712_v40 = vsel %vm1223_vm4, %v1688_v34, %v2952_v37  ;;  %v1713_v41 = vsel %vm1223_vm4, %v1689_v35, %v2953_v36 }
 0x704   : > { %v1716_v42 = vpack.c.bf16 %v1713_v41, %v1712_v40  ;;  %v2969_v41 = vld [vmem:[%s3652_s30 + $0x38] sm:$0xff]  }
 0x705   : > { %2776 = vmatprep.subr.bf16.mxu0 %v2969_v41 }
 0x706   : > { %2764 = vmatprep.mubr.msk.bf16.mxu0 %vm961_vm2, %v1716_v42  ;;  %v2970_v42 = vld [vmem:[%s3652_s30 + $0x30] sm:$0xff]  }
 0x707   : > { %2765 = vmatmul.mubr.msk.bf16.vlgmr.msra.gmra.mxu0 %vm961_vm2, %v1717_v48  ;;  %v2971_v48 = vld [vmem:[%s3652_s30 + $0x28] sm:$0xff]  }
 0x708   : > { %2777 = vmatpush3.bf16.msra.mxu0 %v2969_v41 }
 0x709   : > { %2778 = vmatprep.subr.bf16.mxu0 %v2970_v42 }
 0x70c   : > { %2779 = vmatpush3.bf16.msra.mxu0 %v2970_v42 }
 0x70d   : > { %2780 = vmatprep.subr.bf16.mxu0 %v2971_v48 }
 0x710   : > { %2781 = vmatpush3.bf16.msra.mxu0 %v2971_v48 }
 0x7c7   : > { %v2766_v43 = vpop.f32.mrf.mxu0 }
 0x7c8   : > { %v1790_v52 = vadd.f32 %v2766_v43, %v2601_v44  ;;  %v2972_v43 = vld [vmem:[%s3652_s30 + $0x20] sm:$0xff]  }
 0x7c9   : > { %v1781_v45 = vpop.f32.mrf.mxu0  ;;  %2782 = vmatprep.subr.bf16.mxu0 %v2972_v43 }
 0x7ca   : > { %v1782_v46 = vadd.f32 %v2601_v44, %v1781_v45  ;;  %v3809_v60 = vadd.f32 %v1790_v52, %v3697_v57  ;;  %2783 = vmatpush3.bf16.msra.mxu0 %v2972_v43  ;;  %v2974_v45 = vld [vmem:[%s3652_s30 + $0x10] sm:$0xff]  }
 0x7cb   : > { %v2767_v47 = vpop.f32.mrf.mxu0 }
 0x7cc   : > { %v3798_v49 = vadd.f32 %v1782_v46, %v3695_v56  ;;  %v1793_v50 = vadd.f32 %v2767_v47, %v2601_v44  ;;  %v2975_v46 = vld [vmem:[%s3652_s30 + $0x8] sm:$0xff]   ;;  %v2976_v47 = vld [vmem:[%s3652_s30] sm:$0xff]  }
 0x7cd   : > { %v1784_v51 = vpop.f32.mrf.mxu0 }
 0x7ce   : > { %v3801_v53 = vadd.f32 %v1793_v50, %v3705_v61  ;;  %v1785_v54 = vadd.f32 %v2601_v44, %v1784_v51  ;;  %v1800_v55 = vsel %vm961_vm2, %v3798_v49, 0.0  ;;  %v1806_v61 = vsel %vm961_vm2, %v3809_v60, 0.0  ;;  %v2973_v44 = vld [vmem:[%s3652_s30 + $0x18] sm:$0xff]   ;;  %v2606_v50 = vld [vmem:[%s3977_s5] ss:$0 sm:$0xff] }
 0x7cf   : > { %1801 = vadd.xlane.f32.xlu1 %v1800_v55  ;;  %2784 = vmatprep.subr.bf16.mxu0 %v2973_v44 }
 0x7d0   : > { %v3806_v59 = vadd.f32 %v1785_v54, %v3699_v58  ;;  %v1809_v62 = vsel %vm961_vm2, %v3801_v53, 0.0  ;;  %2785 = vmatpush3.bf16.msra.mxu0 %v2973_v44 }
 0x7d1   : > { %2786 = vmatprep.subr.bf16.mxu0 %v2974_v45 }
 0x7d2   : > { %v1803_v56 = vsel %vm961_vm2, %v3806_v59, 0.0 }
 0x7d3   : > { %1804 = vadd.xlane.f32.xlu0 %v1803_v56  ;;  %1810 = vadd.xlane.f32.xlu1 %v1809_v62 }
 0x7d4   : > { %2787 = vmatpush3.bf16.msra.mxu0 %v2974_v45 }
 0x7d5   : > { %2788 = vmatprep.subr.bf16.mxu0 %v2975_v46 }
 0x7d7   : > { %1807 = vadd.xlane.f32.xlu0 %v1806_v61 }
 0x7d8   : > { %2789 = vmatpush3.bf16.msra.mxu0 %v2975_v46 }
 0x7d9   : > { %2790 = vmatprep.subr.bf16.mxu0 %v2976_v47 }
 0x7dc   : > { %2791 = vmatpush3.bf16.msra.mxu0 %v2976_v47 }
 0x858   : > { %v1802_v63 = vpop.xlane.xlu1 %1801 }
 0x859   : > { %v1812_v0 = vmul.f32 0.03125, %v1802_v63 }
 0x85b   : > { %v1816_v58 = vsub.f32 %v3798_v49, %v1812_v0 }
 0x85c   : > { %v1805_v1 = vpop.xlane.xlu0 %1804  ;;  %v1811_v2 = vpop.xlane.xlu1 %1810 }
 0x85d   : > { %v1813_v57 = vmul.f32 0.03125, %v1805_v1  ;;  %v1815_v3 = vmul.f32 0.03125, %v1811_v2  ;;  %v1820_v4 = vmul.f32 %v1816_v58, %v1816_v58 }
 0x85f   : > { %v1817_v5 = vsub.f32 %v3806_v59, %v1813_v57  ;;  %v1819_v6 = vsub.f32 %v3801_v53, %v1815_v3  ;;  %v1824_v8 = vsel %vm961_vm2, %v1820_v4, 0.0 }
 0x860   : > { %v1808_v9 = vpop.xlane.xlu0 %1807  ;;  %1825 = vadd.xlane.f32.xlu0 %v1824_v8 }
 0x861   : > { %v1814_v10 = vmul.f32 0.03125, %v1808_v9  ;;  %v1821_v11 = vmul.f32 %v1817_v5, %v1817_v5  ;;  %v1823_v14 = vmul.f32 %v1819_v6, %v1819_v6 }
 0x863   : > { %v1818_v12 = vsub.f32 %v3809_v60, %v1814_v10  ;;  %v1827_v13 = vsel %vm961_vm2, %v1821_v11, 0.0  ;;  %v1833_v17 = vsel %vm961_vm2, %v1823_v14, 0.0 }
 0x864   : > { %1828 = vadd.xlane.f32.xlu1 %v1827_v13 }
 0x865   : > { %v1822_v15 = vmul.f32 %v1818_v12, %v1818_v12 }
 0x867   : > { %v1830_v16 = vsel %vm961_vm2, %v1822_v15, 0.0 }
 0x868   : > { %1831 = vadd.xlane.f32.xlu0 %v1830_v16  ;;  %1834 = vadd.xlane.f32.xlu1 %v1833_v17 }
 0x8e9   : > { %v1826_v19 = vpop.xlane.xlu0 %1825 }
 0x8ea   : > { %v1836_v20 = vmul.f32 0.03125, %v1826_v19 }
 0x8ec   : > { %v1840_v21 = vadd.f32 1e-05, %v1836_v20 }
 0x8ed   : > { %v1829_v22 = vpop.xlane.xlu1 %1828 }
 0x8ee   : > { %v1837_v23 = vmul.f32 0.03125, %v1829_v22  ;;  %3017 = vrsqrt.f32 %v1840_v21 }
 0x8f0   : > { %v1841_v24 = vadd.f32 1e-05, %v1837_v23 }
 0x8f1   : > { %v1832_v25 = vpop.xlane.xlu0 %1831  ;;  %v1835_v26 = vpop.xlane.xlu1 %1834 }
 0x8f2   : > { %3019 = vrsqrt.f32 %v1841_v24  ;;  %v1838_v27 = vmul.f32 0.03125, %v1832_v25  ;;  %v1839_v28 = vmul.f32 0.03125, %v1835_v26 }
 0x8f4   : > { %v1842_v29 = vadd.f32 1e-05, %v1838_v27  ;;  %v1843_v30 = vadd.f32 1e-05, %v1839_v28 }
 0x8f6   : > { %3021 = vrsqrt.f32 %v1842_v29 }
 0x8f7   : > { %3023 = vrsqrt.f32 %v1843_v30 }
 0x8fb   : > { %v3018_v31 = vpop.eup %3017 }
 0x8fc   : > { %v1848_v33 = vmul.f32 %v3018_v31, %v1816_v58 }
 0x8ff   : > { %v3020_v32 = vpop.eup %3019 }
 0x900   : > { %v1849_v34 = vmul.f32 %v3020_v32, %v1817_v5 }
 0x902   : > { %v1852_v35 = vpack.c.bf16 %v1849_v34, %v1848_v33 }
 0x903   : > { %v3022_v36 = vpop.eup %3021 }
 0x904   : > { %v3024_v37 = vpop.eup %3023  ;;  %2772 = vmatprep.mubr.msk.bf16.mxu1 %vm961_vm2, %v1852_v35  ;;  %v1850_v38 = vmul.f32 %v3022_v36, %v1818_v12  ;;  %v2611_v36 = vld [vmem:[%s858_s15] ss:$0 sm:$0xff] }
 0x905   : > { %v1851_v39 = vmul.f32 %v3024_v37, %v1819_v6 }
 0x907   : > { %v1853_v40 = vpack.c.bf16 %v1851_v39, %v1850_v38 }
 0x909   : > { %2773 = vmatmul.mubr.msk.bf16.vlgmr.msra.gmra.mxu1 %vm961_vm2, %v1853_v40 }
 0x9c9   : > { %v2774_v51 = vpop.f32.mrf.mxu1 }
 0x9ca   : > { %v1926_v52 = vadd.f32 %v2774_v51, %v2606_v50 }
 0x9cb   : > { %v1917_v54 = vpop.f32.mrf.mxu1 }
 0x9cc   : > { %v1934_v55 = vmul.f32 %v1926_v52, %v1926_v52  ;;  %v1918_v56 = vadd.f32 %v2606_v50, %v1917_v54 }
 0x9cd   : > { %v2775_v62 = vpop.f32.mrf.mxu1 }
 0x9ce   : > { %v1938_v61 = vmul.f32 %v1934_v55, %v1926_v52  ;;  %v1932_v63 = vmul.f32 %v1918_v56, %v1918_v56  ;;  %v1929_v0 = vadd.f32 %v2775_v62, %v2606_v50 }
 0x9cf   : > { %v1920_v58 = vpop.f32.mrf.mxu1 }
 0x9d0   : > { %v1942_v1 = vmul.f32 0.044715, %v1938_v61  ;;  %v1936_v2 = vmul.f32 %v1932_v63, %v1918_v56  ;;  %v1935_v57 = vmul.f32 %v1929_v0, %v1929_v0  ;;  %v1921_v3 = vadd.f32 %v2606_v50, %v1920_v58 }
 0x9d2   : > { %v1946_v4 = vadd.f32 %v1942_v1, %v1926_v52  ;;  %v1940_v5 = vmul.f32 0.044715, %v1936_v2  ;;  %v1939_v6 = vmul.f32 %v1935_v57, %v1929_v0  ;;  %v1933_v8 = vmul.f32 %v1921_v3, %v1921_v3 }
 0x9d4   : > { %v1950_v9 = vmul.f32 0.7978846, %v1946_v4  ;;  %v1944_v10 = vadd.f32 %v1940_v5, %v1918_v56  ;;  %v1943_v11 = vmul.f32 0.044715, %v1939_v6  ;;  %v1937_v12 = vmul.f32 %v1933_v8, %v1921_v3 }
 0x9d6   : > { %v1948_v13 = vmul.f32 0.7978846, %v1944_v10  ;;  %v1947_v14 = vadd.f32 %v1943_v11, %v1929_v0  ;;  %v1941_v15 = vmul.f32 0.044715, %v1937_v12  ;;  %3025 = vtanh.f32 %v1950_v9 }
 0x9d8   : > { %3027 = vtanh.f32 %v1948_v13  ;;  %v1951_v16 = vmul.f32 0.7978846, %v1947_v14  ;;  %v1945_v17 = vadd.f32 %v1941_v15, %v1921_v3 }
 0x9da   : > { %3029 = vtanh.f32 %v1951_v16  ;;  %v1949_v7 = vmul.f32 0.7978846, %v1945_v17 }
 0x9dc   : > { %3031 = vtanh.f32 %v1949_v7 }
 0x9e3   : > { %v3026_v18 = vpop.eup %3025 }
 0x9e4   : > { %v1958_v22 = vadd.f32 1.0, %v3026_v18 }
 0x9e5   : > { %v3028_v19 = vpop.eup %3027 }
 0x9e6   : > { %v1956_v20 = vadd.f32 1.0, %v3028_v19  ;;  %v1962_v28 = vmul.f32 0.5, %v1958_v22 }
 0x9e7   : > { %v3030_v21 = vpop.eup %3029 }
 0x9e8   : > { %v1959_v23 = vadd.f32 1.0, %v3030_v21  ;;  %v1960_v27 = vmul.f32 0.5, %v1956_v20  ;;  %v1966_v33 = vmul.f32 %v1962_v28, %v1926_v52 }
 0x9e9   : > { %v3032_v24 = vpop.eup %3031 }
 0x9ea   : > { %v1963_v25 = vmul.f32 0.5, %v1959_v23  ;;  %v1957_v26 = vadd.f32 1.0, %v3032_v24  ;;  %v1964_v31 = vmul.f32 %v1960_v27, %v1918_v56 }
 0x9ec   : > { %v1961_v29 = vmul.f32 0.5, %v1957_v26  ;;  %v1967_v30 = vmul.f32 %v1963_v25, %v1929_v0 }
 0x9ee   : > { %v1965_v32 = vmul.f32 %v1961_v29, %v1921_v3  ;;  %v1969_v35 = vpack.c.bf16 %v1967_v30, %v1966_v33 }
 0x9f0   : > { %v1968_v34 = vpack.c.bf16 %v1965_v32, %v1964_v31 }
 0x9f2   : > { %2792 = vmatprep.mubr.bf16.mxu0 %v1968_v34 }
 0x9f3   : > { %2793 = vmatmul.mubr.bf16.vlgmr.msra.gmra.mxu0 %v1969_v35 }
 0xab3   : > { %v2794_v37 = vpop.f32.mrf.mxu0 }
 0xab4   : > { %v2084_v38 = vadd.f32 %v2794_v37, %v2611_v36 }
 0xab5   : > { %v2075_v39 = vpop.f32.mrf.mxu0 }
 0xab6   : > { %v2092_v40 = vadd.f32 %v2084_v38, %v3809_v60  ;;  %v2076_v41 = vadd.f32 %v2611_v36, %v2075_v39 }
 0xab7   : > { %v2795_v42 = vpop.f32.mrf.mxu0 }
 0xab8   : > { %2096 = vst.msk [vmem:[#allocation2 + $0x10] sm:$0xff] %vm961_vm2, %v2092_v40  ;;  %v2090_v48 = vadd.f32 %v2076_v41, %v3798_v49  ;;  %v2087_v43 = vadd.f32 %v2795_v42, %v2611_v36 }
 0xab9   : > { %v2078_v44 = vpop.f32.mrf.mxu0 }
 0xaba   : > { %2094 = vst.msk [vmem:[#allocation2] sm:$0xff] %vm961_vm2, %v2090_v48  ;;  %v2093_v45 = vadd.f32 %v2087_v43, %v3801_v53  ;;  %v2079_v46 = vadd.f32 %v2611_v36, %v2078_v44  ;;  %2101 = sbr.rel (%p2620_p11) target bundleno = 3170 (0xc62), region = 116 }
 0xabc   : > { %2097 = vst.msk [vmem:[#allocation2 + $0x18] sm:$0xff] %vm961_vm2, %v2093_v45  ;;  %v2091_v47 = vadd.f32 %v2079_v46, %v3806_v59 }
 0xabe   : > { %2095 = vst.msk [vmem:[#allocation2 + $0x8] sm:$0xff] %vm961_vm2, %v2091_v47 }
 0xabf   : > { %2102 = vst.msk [vmem:[#allocation15] sm:$0xff] %vm961_vm2, %v2090_v48  ;;  %2103 = vst.msk [vmem:[#allocation15 + $0x8] sm:$0xff] %vm961_vm2, %v2091_v47  ;;  %v3033_v49 = vld [vmem:[%s3979_s8 + $0x8] sm:$0xff]   ;;  %v2106_v53 = vpack.c.bf16 %v2091_v47, %v2090_v48  ;;  %v3034_v59 = vld [vmem:[%s3979_s8] sm:$0xff]   ;;  %v2107_v60 = vpack.c.bf16 %v2093_v45, %v2092_v40  ;;  %vm2274_vm5 = vcmask 523264  }
 0xac0   : > { %2104 = vst.msk [vmem:[#allocation15 + $0x10] sm:$0xff] %vm961_vm2, %v2092_v40  ;;  %2105 = vst.msk [vmem:[#allocation15 + $0x18] sm:$0xff] %vm961_vm2, %v2093_v45  ;;  %2796 = vmatprep.subr.bf16.mxu0 %v3033_v49  ;;  %v3035_v50 = vld [vmem:[#allocation13 + $0x8] sm:$0xff]   ;;  %v3036_v51 = vld [vmem:[#allocation13] sm:$0xff]  }
 0xac1   : > { %2800 = vmatprep.mubr.msk.bf16.mxu0 %vm961_vm2, %v2106_v53  ;;  %2797 = vmatpush3.bf16.msra.mxu0 %v3033_v49  ;;  %v2621_v55 = vld [vmem:[%s3980_s23] ss:$0 sm:$0xff] }
 0xac2   : > { %2798 = vmatprep.subr.bf16.mxu0 %v3034_v59  ;;  %2804 = vmatprep.subr.bf16.mxu1 %v3035_v50  ;;  %v2626_v6 = vld [vmem:[%s3981_s22] ss:$0 sm:$0xff] }
 0xac3   : > { %2805 = vmatpush3.bf16.msra.mxu1 %v3035_v50 }
 0xac4   : > { %2806 = vmatprep.subr.bf16.mxu1 %v3036_v51 }
 0xac5   : > { %2799 = vmatpush3.bf16.msra.mxu0 %v3034_v59 }
 0xac7   : > { %2807 = vmatpush3.bf16.msra.mxu1 %v3036_v51 }
 0xac8   : > { %2801 = vmatmul.mubr.msk.bf16.vlgmr.msra.gmra.mxu0 %vm961_vm2, %v2107_v60 }
 0xb88   : > { %v2802_v52 = vpop.f32.mrf.mxu0 }
 0xb89   : > { %v2180_v63 = vadd.f32 %v2802_v52, %v2621_v55 }
 0xb8a   : > { %v2171_v54 = vpop.f32.mrf.mxu0 }
 0xb8b   : > { %v2172_v62 = vadd.f32 %v2621_v55, %v2171_v54  ;;  %v2188_v3 = vmax.f32 %v2180_v63, 0.0 }
 0xb8c   : > { %v2803_v56 = vpop.f32.mrf.mxu0 }
 0xb8d   : > { %v2183_v61 = vadd.f32 %v2803_v56, %v2621_v55  ;;  %v2186_v2 = vmax.f32 %v2172_v62, 0.0 }
 0xb8e   : > { %v2174_v0 = vpop.f32.mrf.mxu0 }
 0xb8f   : > { %v2175_v58 = vadd.f32 %v2621_v55, %v2174_v0  ;;  %v2189_v1 = vmax.f32 %v2183_v61, 0.0 }
 0xb91   : > { %v2187_v57 = vmax.f32 %v2175_v58, 0.0  ;;  %v2191_v5 = vpack.c.bf16 %v2189_v1, %v2188_v3 }
 0xb93   : > { %v2190_v4 = vpack.c.bf16 %v2187_v57, %v2186_v2 }
 0xb95   : > { %2808 = vmatprep.mubr.msk.bf16.mxu1 %vm961_vm2, %v2190_v4 }
 0xb96   : > { %2809 = vmatmul.mubr.msk.bf16.vlgmr.msra.gmra.mxu1 %vm961_vm2, %v2191_v5 }
 0xc56   : > { %v2810_v8 = vpop.f32.mrf.mxu1 }
 0xc57   : > { %v2264_v9 = vadd.f32 %v2810_v8, %v2626_v6 }
 0xc58   : > { %v2255_v10 = vpop.f32.mrf.mxu1 }
 0xc59   : > { %v2272_v11 = vmax.f32 %v2264_v9, 0.0  ;;  %v2256_v12 = vadd.f32 %v2626_v6, %v2255_v10 }
 0xc5a   : > { %v2811_v13 = vpop.f32.mrf.mxu1 }
 0xc5b   : > { %2277 = vst.msk [vmem:[#allocation16 + $0x10] sm:$0xff] %vm2274_vm5, %v2272_v11  ;;  %v2270_v14 = vmax.f32 %v2256_v12, 0.0  ;;  %v2267_v15 = vadd.f32 %v2811_v13, %v2626_v6 }
 0xc5c   : > { %v2258_v16 = vpop.f32.mrf.mxu1 }
 0xc5d   : > { %2275 = vst.msk [vmem:[#allocation16] sm:$0xff] %vm2274_vm5, %v2270_v14  ;;  %v2273_v17 = vmax.f32 %v2267_v15, 0.0  ;;  %v2259_v7 = vadd.f32 %v2626_v6, %v2258_v16 }
 0xc5f   : > { %2278 = vst.msk [vmem:[#allocation16 + $0x18] sm:$0xff] %vm2274_vm5, %v2273_v17  ;;  %v2271_v18 = vmax.f32 %v2259_v7, 0.0 }
 0xc61   : > { %2276 = vst.msk [vmem:[#allocation16 + $0x8] sm:$0xff] %vm2274_vm5, %v2271_v18 }
 0xc62 PF: > { %p2857_p0 = scmp.eq.s32.totalorder %s3518_s6, 1  ;;  %s3336_s11 = smov [#allocation15]  }
 0xc63   : > { %s2288_s19 = sshll.u32 %s3336_s11, 4  ;;  %s2289_s19 = int_to_ptr.vmem [resolvable:$true] %s2288_s19 }
 0xc64   : > { %s3203_s20 = scalar_lea.vmem %s2289_s19, 512  ;;  %p3210_p12 = scmp.lt.s32.totalorder %s2289_s19, %s2289_s19 }
 0xc65   : > { %p3204_p1 = scmp.ne.s32.totalorder %s2289_s19, %s3203_s20  ;;  %p3211_p13 = scmp.lt.s32.totalorder %s3203_s20, %s3203_s20 }
 0xc67   : > { %p3205_p9 = pnand %p3204_p1, %p2857_p0  ;;  %p3212_p3 = por %p3211_p13, %p3210_p12 }
 0xc69   : > { %p3206_p10 = pneg %p3205_p9 }
 0xc6b   : > { %p3213_p2 = pnand %p3212_p3, %p3206_p10 }
 0xc6d   : > { %3216 = shalt.err (!%p3213_p2)
}
 0xc6e   : > { %s3337_s21 = smov 128   ;;  %s3338_s3 = smov 8  }
 0xc6f   : > { %s3982_s18 = sld [smem:[#allocation39_spill]]  ;;  %s3339_s30 = smov [#allocation16]  }
 0xc70   : > { %s2304_s12 = sshll.u32 %s3339_s30, 4  ;;  %s2305_s12 = int_to_ptr.vmem [resolvable:$true] %s2304_s12 }
 0xc71   : > { %s3227_s0 = scalar_lea.vmem %s2305_s12, 512  ;;  %p3234_p6 = scmp.lt.s32.totalorder %s2305_s12, %s2305_s12 }
 0xc72   : > { %p3228_p4 = scmp.ne.s32.totalorder %s2305_s12, %s3227_s0  ;;  %p3235_p7 = scmp.lt.s32.totalorder %s3227_s0, %s3227_s0 }
 0xc74   : > { %p3229_p5 = pnand %p3228_p4, %p2857_p0  ;;  %p3236_p11 = por %p3235_p7, %p3234_p6 }
 0xc75   : > { %2827 = dma.vmem_to_hbm [thread:$0]  (%p2857_p0), %s2289_s19, 512, %s3982_s18, [#allocation6], %s3337_s21, %s3337_s21, %s3338_s3  }
 0xc76   : > { %p3230_p8 = pneg %p3229_p5 }
 0xc78   : > { %p3237_p1 = pnand %p3236_p11, %p3230_p8 }
 0xc7a   : > { %3240 = shalt.err (!%p3237_p1)
}
 0xc7b   : > { %s3983_s17 = sld [smem:[#allocation40_spill]] }
 0xc81   : > { %2829 = dma.vmem_to_hbm [thread:$0]  (%p2857_p0), %s2305_s12, 512, %s3983_s17, [#allocation17], %s3337_s21, %s3337_s21, %s3338_s3  }
 0xc82   : > { %3292 = dma.done.wait (%p2857_p0), [#allocation6], 512  }
 0xc83   : > { %3294 = vsyncadd (%p2857_p0), [#allocation6], 4294966784 }
 0xc84   : > { %3296 = dma.done.wait (%p2857_p0), [#allocation17], 512  }
 0xc85   : > { %3298 = vsyncadd (%p2857_p0), [#allocation17], 4294966784 }
 0xc86 PF: > { %s40_s29 = sadd.s32 1, %s3321_s29   ;;  %s3984_s27 = sld [smem:[#allocation24_spill]] }
 0xc87   : > { %p37_p9 = scmp.ge.s32.totalorder %s40_s29, 4   ;;  %s3985_s26 = sld [smem:[#allocation26_spill]] }
 0xc88   : > { %s3986_s16 = sld [smem:[#allocation25_spill]]  ;;  %s3987_s24 = smov %s3305_s25 }
 0xc8a   :  { %39 = sbr.rel (!%p37_p9) target bundleno = 26 (0x1a), region = 212 }
 0xc8c   : > { %s3988_s25 = smov %s3984_s27  ;;  %s3989_s27 = smov %s3317_s28 }
 0xc8e   : > { %s3990_s28 = smov %s3986_s16 }
 0xc8f   :  { %2324 = vsyncpa [#allocation5], 1 }
 0xc90   :  { %2326 = vsyncpa [#allocation5 + $0x1], 1 }
 0xc91   :  { %2327 = vsyncpa [#allocation8], 1 }
 0xc92   :  { %2329 = vsyncpa [#allocation8 + $0x1], 1 }
 0xc93   :  { %2330 = vsyncpa [#allocation11], 1 }
 0xc94   :  { %2332 = vsyncpa [#allocation11 + $0x1], 1 }
 0xc95   :  { %2333 = vsyncpa [#allocation14], 1 }
 0xc96   :  { %2334 = vsyncpa [#allocation6], 1 }
 0xc97   :  { %2336 = vsyncpa [#allocation6 + $0x1], 1 }
 0xc98   :  { %2337 = vsyncpa [#allocation17], 1 }

</bundles_post_ra>
